<compile_context>
chip_gen: v7x
topology: tpu7x:2x2x1
jax: 0.10.0
libtpu: 0.0.40
codegen_flags: <defaults>
</compile_context>

<pallas_src>
import functools

import jax
import jax.numpy as jnp
from jax.experimental import pallas as pl
from jax.experimental.pallas import tpu as pltpu


# Sublane-aligned count of leading zero rows in every padded VMEM scratch buffer.
# Must be >= the largest left 'same' padding (3 for k=8).
_LEAD = 8


# ----------------------------------------------------------------------------
# Fused kernel: conv1(+BN+ReLU) -> conv2 -> conv3 -> avgpool -> linear -> logsoftmax
# One grid step == one tile of BT batch elements (stacked as row bands).
# ----------------------------------------------------------------------------
def _fcn1d_fused_kernel(
    x_ref,            # (BT, S, F)  f32   input tile
    mask_ref,         # (R, 1)      f32   1.0 on band rows, 0.0 on gap rows
    w1_ref, b1_ref,   # (K1*F,  C1) bf16, (1, C1) f32   (im2col-flattened, BN folded)
    w2_ref, b2_ref,   # (K2*C1, C2) bf16, (1, C2) f32
    w3_ref, b3_ref,   # (K3*C2, C3) bf16, (1, C3) f32
    wl_ref, bl_ref,   # (C3, nc) f32, (1, nc) f32
    o_ref,            # (BT, nc)    f32   log-probabilities
    pad1_ref,         # (RT, F)  f32 VMEM scratch (padded layer-1 input)
    pad2_ref,         # (RT, C1) f32 VMEM scratch
    pad3_ref,         # (RT, C2) f32 VMEM scratch
    *, S, BT, SLOT, R, K1, K2, K3, PL1, PL2, PL3,
):
    f32, bf16 = jnp.float32, jnp.bfloat16
    mask = mask_ref[...]                                          # (R, 1)

    def conv(pad_ref, k, lpad, w_ref, b_ref):
        # im2col: k shifted row-windows concatenated along lanes -> (R, k*Cin),
        # whole conv + tap accumulation = ONE MXU matmul.
        s0 = _LEAD - lpad
        cols = jnp.concatenate(
            [pad_ref[s0 + t:s0 + t + R, :] for t in range(k)], axis=1).astype(bf16)
        acc = jnp.dot(cols, w_ref[...], preferred_element_type=f32)
        return jnp.maximum(acc + b_ref[...], 0.0)                 # folded-BN bias + ReLU

    # ---------------- Layer 1: Conv1d(k=K1, 'same') + folded BN + ReLU --------------
    pad1_ref[...] = jnp.zeros_like(pad1_ref)
    for b in range(BT):                                           # drop each band at its slot
        r0 = _LEAD + b * SLOT
        pad1_ref[r0:r0 + S, :] = x_ref[b]
    a1 = conv(pad1_ref, K1, PL1, w1_ref, b1_ref) * mask           # (R, C1), gaps zeroed

    # ---------------- Layer 2 -------------------------------------------------------
    pad2_ref[...] = jnp.zeros_like(pad2_ref)
    pad2_ref[_LEAD:_LEAD + R, :] = a1
    a2 = conv(pad2_ref, K2, PL2, w2_ref, b2_ref) * mask           # (R, C2)

    # ---------------- Layer 3 -------------------------------------------------------
    pad3_ref[...] = jnp.zeros_like(pad3_ref)
    pad3_ref[_LEAD:_LEAD + R, :] = a2
    a3 = conv(pad3_ref, K3, PL3, w3_ref, b3_ref)                  # (R, C3); pooling slices
                                                                  # exact bands, no mask needed

    # ---------------- Head: AdaptiveAvgPool1d(1) + Linear + LogSoftmax --------------
    pooled = jnp.concatenate(
        [jnp.mean(a3[b * SLOT:b * SLOT + S, :], axis=0, keepdims=True) for b in range(BT)],
        axis=0)                                                   # (BT, C3)
    logits = jnp.dot(pooled, wl_ref[...], preferred_element_type=f32) + bl_ref[...]
    z = logits - jnp.max(logits, axis=-1, keepdims=True)
    o_ref[...] = z - jnp.log(jnp.sum(jnp.exp(z), axis=-1, keepdims=True))


# ----------------------------------------------------------------------------
# Wrapper: one pallas_call for the whole network
# ----------------------------------------------------------------------------
def fcn1d_forward(x, params, *, batch_tile=8):
    """x: (B, 1, seq_len, num_features) -> (B, num_classes) log-probabilities."""
    B, _, S, F = x.shape
    # torch reshape + permute expressed as channels-last (B, L, C); the kernel consumes
    # channels on the lane axis directly.
    h = x.reshape(B, S, F)

    w1, b1 = params["w1"], params["b1"]          # (K1*F,  128) bf16, (1, 128) f32
    w2, b2 = params["w2"], params["b2"]          # (K2*128,256) bf16, (1, 256) f32
    w3, b3 = params["w3"], params["b3"]          # (K3*256,128) bf16, (1, 128) f32
    wl, bl = params["lin_w"], params["lin_b"]    # (128, nc) f32, (1, nc) f32

    C1, C2 = w1.shape[1], w2.shape[1]
    K1 = w1.shape[0] // F
    K2 = w2.shape[0] // C1
    K3 = w3.shape[0] // C2
    nc = wl.shape[1]
    # PyTorch Conv1d padding='same', stride=1: left = (k-1)//2, right = (k-1) - left.
    PL1, PL2, PL3 = (K1 - 1) // 2, (K2 - 1) // 2, (K3 - 1) // 2
    pl_max = max(PL1, PL2, PL3)
    pr_max = max(K1 - 1 - PL1, K2 - 1 - PL2, K3 - 1 - PL3)

    # Batch tiling: each grid step handles BT batch elements stacked as row bands.
    BT = min(B, batch_tile)
    G = pl.cdiv(B, BT)
    Bp = G * BT
    if Bp != B:                                  # cheap zero pad so every tile is full
        h = jnp.concatenate([h, jnp.zeros((Bp - B, S, F), h.dtype)], axis=0)

    SLOT = ((S + 7) // 8) * 8 + 8                # per-band row slot (8-aligned, gap >= 8)
    R = (BT - 1) * SLOT + S                      # conv output domain rows per grid step
    RT = _LEAD + BT * SLOT                       # padded scratch rows
    assert _LEAD >= pl_max and SLOT - S >= max(pl_max, pr_max)

    # 0/1 row mask over the output domain: 1 on band rows, 0 on inter-band gap rows.
    ridx = jnp.arange(R)
    mask = ((ridx % SLOT) < S).astype(jnp.float32).reshape(R, 1)

    kernel = functools.partial(
        _fcn1d_fused_kernel,
        S=S, BT=BT, SLOT=SLOT, R=R,
        K1=K1, K2=K2, K3=K3, PL1=PL1, PL2=PL2, PL3=PL3)

    out = pl.pallas_call(
        kernel,
        out_shape=jax.ShapeDtypeStruct((Bp, nc), jnp.float32),
        grid=(G,),
        in_specs=[
            pl.BlockSpec((BT, S, F), lambda g: (g, 0, 0)),   # per-tile input slice
            pl.BlockSpec((R, 1), lambda g: (0, 0)),          # band mask (resident)
            pl.BlockSpec(w1.shape, lambda g: (0, 0)),        # weights: constant index_map
            pl.BlockSpec(b1.shape, lambda g: (0, 0)),        #  -> stay resident in VMEM
            pl.BlockSpec(w2.shape, lambda g: (0, 0)),
            pl.BlockSpec(b2.shape, lambda g: (0, 0)),
            pl.BlockSpec(w3.shape, lambda g: (0, 0)),
            pl.BlockSpec(b3.shape, lambda g: (0, 0)),
            pl.BlockSpec(wl.shape, lambda g: (0, 0)),
            pl.BlockSpec(bl.shape, lambda g: (0, 0)),
        ],
        out_specs=pl.BlockSpec((BT, nc), lambda g: (g, 0)),
        scratch_shapes=[
            pltpu.VMEM((RT, F), jnp.float32),    # padded input of layer 1
            pltpu.VMEM((RT, C1), jnp.float32),   # padded input of layer 2
            pltpu.VMEM((RT, C2), jnp.float32),   # padded input of layer 3
        ],
        compiler_params=pltpu.CompilerParams(
            dimension_semantics=("parallel",),   # lets v7x use both TensorCores
        ),
    )(h, mask, w1, b1, w2, b2, w3, b3, wl, bl)
    return out[:B]


# ----------------------------------------------------------------------------
# Parameter construction (deterministic, synthetic), BN folded in eval mode.
# All conv weights pre-flattened to (K*Cin, Cout) for the in-kernel im2col matmuls
# (row index t*Cin + ci matches the tap-major lane concatenation order in the kernel).
# ----------------------------------------------------------------------------
def make_params(key, in_channels, num_classes):
    # BN fold (exact, eval mode):
    #   BN(conv(x,w)+b) = conv(x, w*scale) + ((b - mean)*scale + beta), scale = gamma/sqrt(var+eps)
    eps = 1e-5
    specs = [(in_channels, 128, 8), (128, 256, 5), (256, 128, 3)]
    folded = []
    for cin, cout, k in specs:
        key, k1, k2, k3, k4, k5, k6 = jax.random.split(key, 7)
        w = jax.random.normal(k1, (cout, cin, k), jnp.float32) / jnp.sqrt(cin * k)
        b = 0.1 * jax.random.normal(k2, (cout,), jnp.float32)
        gamma = 1.0 + 0.1 * jax.random.normal(k3, (cout,), jnp.float32)
        beta = 0.1 * jax.random.normal(k4, (cout,), jnp.float32)
        r_mean = 0.1 * jax.random.normal(k5, (cout,), jnp.float32)
        r_var = 1.0 + 0.1 * jax.random.uniform(k6, (cout,), jnp.float32)
        scale = gamma / jnp.sqrt(r_var + eps)
        bias = (b - r_mean) * scale + beta
        w_klc = jnp.transpose(w * scale[:, None, None], (2, 1, 0))   # (K, Cin, Cout)
        folded.append((w_klc.reshape(-1, cout).astype(jnp.bfloat16), bias.reshape(1, cout)))
    (w1, b1), (w2, b2), (w3, b3) = folded
    key, k1, k2 = jax.random.split(key, 3)
    w_lin = jax.random.normal(k1, (num_classes, 128), jnp.float32) / jnp.sqrt(128.0)
    b_lin = 0.1 * jax.random.normal(k2, (num_classes,), jnp.float32)
    return dict(w1=w1, b1=b1, w2=w2, b2=b2, w3=w3, b3=b3,
                lin_w=jnp.transpose(w_lin), lin_b=b_lin.reshape(1, num_classes))


# ----------------------------------------------------------------------------
# Pure-JAX reference (f32 activations) of the same folded-BN network, for checking.
# ----------------------------------------------------------------------------
def _ref_conv_block(h, w_flat, bias, k):
    cin = h.shape[-1]
    w = w_flat.astype(jnp.float32).reshape(k, cin, -1)
    lpad = (k - 1) // 2
    hp = jnp.pad(h, ((0, 0), (lpad, k - 1 - lpad), (0, 0)))
    L = h.shape[1]
    out = sum(jnp.einsum("blc,cd->bld", hp[:, t:t + L, :], w[t]) for t in range(k))
    return jnp.maximum(out + bias, 0.0)


def fcn1d_reference(x, params):
    B, _, S, F = x.shape
    h = x.reshape(B, S, F).astype(jnp.float32)
    k1 = params["w1"].shape[0] // F
    k2 = params["w2"].shape[0] // params["w1"].shape[1]
    k3 = params["w3"].shape[0] // params["w2"].shape[1]
    h = _ref_conv_block(h, params["w1"], params["b1"], k1)
    h = _ref_conv_block(h, params["w2"], params["b2"], k2)
    h = _ref_conv_block(h, params["w3"], params["b3"], k3)
    pooled = jnp.mean(h, axis=1)                                  # (B, 128)
    logits = pooled @ params["lin_w"] + params["lin_b"]
    return jax.nn.log_softmax(logits, axis=-1)


if __name__ == "__main__":
    B, SEQ, FEAT, NUM_CLASSES = 2, 16, 16, 20

    key = jax.random.PRNGKey(0)
    kx, kp = jax.random.split(key)
    x = jax.random.normal(kx, (B, 1, SEQ, FEAT), jnp.float32)
    params = make_params(kp, in_channels=FEAT, num_classes=NUM_CLASSES)

    out = jax.jit(fcn1d_forward)(x, params)
    out = jax.block_until_ready(out)

    assert out.shape == (B, NUM_CLASSES)
    assert bool(jnp.all(jnp.isfinite(out)))
    # log-softmax rows should sum (in prob space) to ~1
    assert bool(jnp.allclose(jnp.sum(jnp.exp(out), axis=1), 1.0, atol=1e-4))
    # cross-check against a pure-JAX reference (bf16 MXU operands -> loose tolerance)
    ref = fcn1d_reference(x, params)
    assert bool(jnp.allclose(out, ref, atol=5e-2, rtol=1e-3))
    print("KERNEL_OK")
</pallas_src>

<mosaic_0001>
module attributes {stable_mosaic.version = 11 : i64} {
  func.func @_fcn1d_fused_kernel(%arg0: i32, %arg1: memref<2x16x16xf32, #tpu.memory_space<vmem>>, %arg2: memref<40x1xf32, #tpu.memory_space<vmem>>, %arg3: memref<128x128xbf16, #tpu.memory_space<vmem>>, %arg4: memref<1x128xf32, #tpu.memory_space<vmem>>, %arg5: memref<640x256xbf16, #tpu.memory_space<vmem>>, %arg6: memref<1x256xf32, #tpu.memory_space<vmem>>, %arg7: memref<768x128xbf16, #tpu.memory_space<vmem>>, %arg8: memref<1x128xf32, #tpu.memory_space<vmem>>, %arg9: memref<128x20xf32, #tpu.memory_space<vmem>>, %arg10: memref<1x20xf32, #tpu.memory_space<vmem>>, %arg11: memref<2x20xf32, #tpu.memory_space<vmem>>, %arg12: memref<56x16xf32, #tpu.memory_space<vmem>>, %arg13: memref<56x128xf32, #tpu.memory_space<vmem>>, %arg14: memref<56x256xf32, #tpu.memory_space<vmem>>) attributes {dimension_semantics = [#tpu.dimension_semantics<parallel>], iteration_bounds = array<i64: 1>, scalar_prefetch = 0 : i64, scratch_operands = 3 : i64, tpu.core_type = #tpu.core_type<tc>, window_params = [{transform_indices = @transform_0, window_bounds = array<i64: 2, 16, 16>}, {pipeline_mode = #tpu.pipeline_mode<synchronous>, transform_indices = @transform_1, window_bounds = array<i64: 40, 1>}, {pipeline_mode = #tpu.pipeline_mode<synchronous>, transform_indices = @transform_2, window_bounds = array<i64: 128, 128>}, {pipeline_mode = #tpu.pipeline_mode<synchronous>, transform_indices = @transform_3, window_bounds = array<i64: 1, 128>}, {pipeline_mode = #tpu.pipeline_mode<synchronous>, transform_indices = @transform_4, window_bounds = array<i64: 640, 256>}, {pipeline_mode = #tpu.pipeline_mode<synchronous>, transform_indices = @transform_5, window_bounds = array<i64: 1, 256>}, {pipeline_mode = #tpu.pipeline_mode<synchronous>, transform_indices = @transform_6, window_bounds = array<i64: 768, 128>}, {pipeline_mode = #tpu.pipeline_mode<synchronous>, transform_indices = @transform_7, window_bounds = array<i64: 1, 128>}, {pipeline_mode = #tpu.pipeline_mode<synchronous>, transform_indices = @transform_8, window_bounds = array<i64: 128, 20>}, {pipeline_mode = #tpu.pipeline_mode<synchronous>, transform_indices = @transform_9, window_bounds = array<i64: 1, 20>}, {transform_indices = @transform_10, window_bounds = array<i64: 2, 20>}]} {
    %c0 = arith.constant 0 : index
    %c0_0 = arith.constant 0 : index
    %0 = vector.load %arg2[%c0, %c0_0] : memref<40x1xf32, #tpu.memory_space<vmem>>, vector<40x1xf32>
    %cst = arith.constant 0.000000e+00 : f32
    %1 = vector.broadcast %cst : f32 to vector<56x16xf32>
    %c0_1 = arith.constant 0 : index
    %c0_2 = arith.constant 0 : index
    %2 = vector.load %arg12[%c0_1, %c0_2] : memref<56x16xf32, #tpu.memory_space<vmem>>, vector<56x16xf32>
    tpu.vector_store %arg12[%c0_1, %c0_2], %1 {strides = array<i32>} : memref<56x16xf32, #tpu.memory_space<vmem>>, vector<56x16xf32>,
    %c0_3 = arith.constant 0 : index
    %c0_4 = arith.constant 0 : index
    %c0_5 = arith.constant 0 : index
    %3 = vector.load %arg1[%c0_3, %c0_4, %c0_5] : memref<2x16x16xf32, #tpu.memory_space<vmem>>, vector<1x16x16xf32>
    %4 = vector.shape_cast %3 : vector<1x16x16xf32> to vector<16x16xf32>
    %c8 = arith.constant 8 : index
    %c0_6 = arith.constant 0 : index
    %5 = vector.load %arg12[%c8, %c0_6] : memref<56x16xf32, #tpu.memory_space<vmem>>, vector<16x16xf32>
    tpu.vector_store %arg12[%c8, %c0_6], %4 {strides = array<i32>} : memref<56x16xf32, #tpu.memory_space<vmem>>, vector<16x16xf32>,
    %c1 = arith.constant 1 : index
    %c0_7 = arith.constant 0 : index
    %c0_8 = arith.constant 0 : index
    %6 = vector.load %arg1[%c1, %c0_7, %c0_8] : memref<2x16x16xf32, #tpu.memory_space<vmem>>, vector<1x16x16xf32>
    %7 = vector.shape_cast %6 : vector<1x16x16xf32> to vector<16x16xf32>
    %c32 = arith.constant 32 : index
    %c0_9 = arith.constant 0 : index
    %8 = vector.load %arg12[%c32, %c0_9] : memref<56x16xf32, #tpu.memory_space<vmem>>, vector<16x16xf32>
    tpu.vector_store %arg12[%c32, %c0_9], %7 {strides = array<i32>} : memref<56x16xf32, #tpu.memory_space<vmem>>, vector<16x16xf32>,
    %c5 = arith.constant 5 : index
    %c0_10 = arith.constant 0 : index
    %9 = vector.load %arg12[%c5, %c0_10] : memref<56x16xf32, #tpu.memory_space<vmem>>, vector<40x16xf32>
    %c6 = arith.constant 6 : index
    %c0_11 = arith.constant 0 : index
    %10 = vector.load %arg12[%c6, %c0_11] : memref<56x16xf32, #tpu.memory_space<vmem>>, vector<40x16xf32>
    %c7 = arith.constant 7 : index
    %c0_12 = arith.constant 0 : index
    %11 = vector.load %arg12[%c7, %c0_12] : memref<56x16xf32, #tpu.memory_space<vmem>>, vector<40x16xf32>
    %c8_13 = arith.constant 8 : index
    %c0_14 = arith.constant 0 : index
    %12 = vector.load %arg12[%c8_13, %c0_14] : memref<56x16xf32, #tpu.memory_space<vmem>>, vector<40x16xf32>
    %c9 = arith.constant 9 : index
    %c0_15 = arith.constant 0 : index
    %13 = vector.load %arg12[%c9, %c0_15] : memref<56x16xf32, #tpu.memory_space<vmem>>, vector<40x16xf32>
    %c10 = arith.constant 10 : index
    %c0_16 = arith.constant 0 : index
    %14 = vector.load %arg12[%c10, %c0_16] : memref<56x16xf32, #tpu.memory_space<vmem>>, vector<40x16xf32>
    %c11 = arith.constant 11 : index
    %c0_17 = arith.constant 0 : index
    %15 = vector.load %arg12[%c11, %c0_17] : memref<56x16xf32, #tpu.memory_space<vmem>>, vector<40x16xf32>
    %c12 = arith.constant 12 : index
    %c0_18 = arith.constant 0 : index
    %16 = vector.load %arg12[%c12, %c0_18] : memref<56x16xf32, #tpu.memory_space<vmem>>, vector<40x16xf32>
    %17 = tpu.concatenate %9, %10, %11, %12, %13, %14, %15, %16 in 1 : vector<40x16xf32>, vector<40x16xf32>, vector<40x16xf32>, vector<40x16xf32>, vector<40x16xf32>, vector<40x16xf32>, vector<40x16xf32>, vector<40x16xf32> -> vector<40x128xf32>
    %18 = arith.truncf %17 : vector<40x128xf32> to vector<40x128xbf16>
    %c0_19 = arith.constant 0 : index
    %c0_20 = arith.constant 0 : index
    %19 = vector.load %arg3[%c0_19, %c0_20] : memref<128x128xbf16, #tpu.memory_space<vmem>>, vector<128x128xbf16>
    %cst_21 = arith.constant dense<0.000000e+00> : vector<40x128xf32>
    %20 = tpu.matmul %18, %19, %cst_21 {dimension_numbers = #tpu.dot_dimension_numbers<[1], [0], [0], [1], [0, 0, 1, 1], [], []>} : vector<40x128xbf16>, vector<128x128xbf16>, vector<40x128xf32> -> vector<40x128xf32>
    %c0_22 = arith.constant 0 : index
    %c0_23 = arith.constant 0 : index
    %21 = vector.load %arg4[%c0_22, %c0_23] : memref<1x128xf32, #tpu.memory_space<vmem>>, vector<1x128xf32>
    %22 = vector.broadcast %21 : vector<1x128xf32> to vector<40x128xf32>
    %23 = arith.addf %20, %22 : vector<40x128xf32>
    %cst_24 = arith.constant 0.000000e+00 : f32
    %24 = vector.broadcast %cst_24 : f32 to vector<40x128xf32>
    %25 = arith.maximumf %23, %24 : vector<40x128xf32>
    %26 = vector.broadcast %0 : vector<40x1xf32> to vector<40x128xf32>
    %27 = arith.mulf %25, %26 : vector<40x128xf32>
    %cst_25 = arith.constant 0.000000e+00 : f32
    %28 = vector.broadcast %cst_25 : f32 to vector<56x128xf32>
    %c0_26 = arith.constant 0 : index
    %c0_27 = arith.constant 0 : index
    %29 = vector.load %arg13[%c0_26, %c0_27] : memref<56x128xf32, #tpu.memory_space<vmem>>, vector<56x128xf32>
    tpu.vector_store %arg13[%c0_26, %c0_27], %28 {strides = array<i32>} : memref<56x128xf32, #tpu.memory_space<vmem>>, vector<56x128xf32>,
    %c8_28 = arith.constant 8 : index
    %c0_29 = arith.constant 0 : index
    %30 = vector.load %arg13[%c8_28, %c0_29] : memref<56x128xf32, #tpu.memory_space<vmem>>, vector<40x128xf32>
    tpu.vector_store %arg13[%c8_28, %c0_29], %27 {strides = array<i32>} : memref<56x128xf32, #tpu.memory_space<vmem>>, vector<40x128xf32>,
    %c6_30 = arith.constant 6 : index
    %c0_31 = arith.constant 0 : index
    %31 = vector.load %arg13[%c6_30, %c0_31] : memref<56x128xf32, #tpu.memory_space<vmem>>, vector<40x128xf32>
    %c7_32 = arith.constant 7 : index
    %c0_33 = arith.constant 0 : index
    %32 = vector.load %arg13[%c7_32, %c0_33] : memref<56x128xf32, #tpu.memory_space<vmem>>, vector<40x128xf32>
    %c8_34 = arith.constant 8 : index
    %c0_35 = arith.constant 0 : index
    %33 = vector.load %arg13[%c8_34, %c0_35] : memref<56x128xf32, #tpu.memory_space<vmem>>, vector<40x128xf32>
    %c9_36 = arith.constant 9 : index
    %c0_37 = arith.constant 0 : index
    %34 = vector.load %arg13[%c9_36, %c0_37] : memref<56x128xf32, #tpu.memory_space<vmem>>, vector<40x128xf32>
    %c10_38 = arith.constant 10 : index
    %c0_39 = arith.constant 0 : index
    %35 = vector.load %arg13[%c10_38, %c0_39] : memref<56x128xf32, #tpu.memory_space<vmem>>, vector<40x128xf32>
    %36 = tpu.concatenate %31, %32, %33, %34, %35 in 1 : vector<40x128xf32>, vector<40x128xf32>, vector<40x128xf32>, vector<40x128xf32>, vector<40x128xf32> -> vector<40x640xf32>
    %37 = arith.truncf %36 : vector<40x640xf32> to vector<40x640xbf16>
    %c0_40 = arith.constant 0 : index
    %c0_41 = arith.constant 0 : index
    %38 = vector.load %arg5[%c0_40, %c0_41] : memref<640x256xbf16, #tpu.memory_space<vmem>>, vector<640x256xbf16>
    %cst_42 = arith.constant dense<0.000000e+00> : vector<40x256xf32>
    %39 = tpu.matmul %37, %38, %cst_42 {dimension_numbers = #tpu.dot_dimension_numbers<[1], [0], [0], [1], [0, 0, 1, 1], [], []>} : vector<40x640xbf16>, vector<640x256xbf16>, vector<40x256xf32> -> vector<40x256xf32>
    %c0_43 = arith.constant 0 : index
    %c0_44 = arith.constant 0 : index
    %40 = vector.load %arg6[%c0_43, %c0_44] : memref<1x256xf32, #tpu.memory_space<vmem>>, vector<1x256xf32>
    %41 = vector.broadcast %40 : vector<1x256xf32> to vector<40x256xf32>
    %42 = arith.addf %39, %41 : vector<40x256xf32>
    %cst_45 = arith.constant 0.000000e+00 : f32
    %43 = vector.broadcast %cst_45 : f32 to vector<40x256xf32>
    %44 = arith.maximumf %42, %43 : vector<40x256xf32>
    %45 = vector.broadcast %0 : vector<40x1xf32> to vector<40x256xf32>
    %46 = arith.mulf %44, %45 : vector<40x256xf32>
    %cst_46 = arith.constant 0.000000e+00 : f32
    %47 = vector.broadcast %cst_46 : f32 to vector<56x256xf32>
    %c0_47 = arith.constant 0 : index
    %c0_48 = arith.constant 0 : index
    %48 = vector.load %arg14[%c0_47, %c0_48] : memref<56x256xf32, #tpu.memory_space<vmem>>, vector<56x256xf32>
    tpu.vector_store %arg14[%c0_47, %c0_48], %47 {strides = array<i32>} : memref<56x256xf32, #tpu.memory_space<vmem>>, vector<56x256xf32>,
    %c8_49 = arith.constant 8 : index
    %c0_50 = arith.constant 0 : index
    %49 = vector.load %arg14[%c8_49, %c0_50] : memref<56x256xf32, #tpu.memory_space<vmem>>, vector<40x256xf32>
    tpu.vector_store %arg14[%c8_49, %c0_50], %46 {strides = array<i32>} : memref<56x256xf32, #tpu.memory_space<vmem>>, vector<40x256xf32>,
    %c7_51 = arith.constant 7 : index
    %c0_52 = arith.constant 0 : index
    %50 = vector.load %arg14[%c7_51, %c0_52] : memref<56x256xf32, #tpu.memory_space<vmem>>, vector<40x256xf32>
    %c8_53 = arith.constant 8 : index
    %c0_54 = arith.constant 0 : index
    %51 = vector.load %arg14[%c8_53, %c0_54] : memref<56x256xf32, #tpu.memory_space<vmem>>, vector<40x256xf32>
    %c9_55 = arith.constant 9 : index
    %c0_56 = arith.constant 0 : index
    %52 = vector.load %arg14[%c9_55, %c0_56] : memref<56x256xf32, #tpu.memory_space<vmem>>, vector<40x256xf32>
    %53 = tpu.concatenate %50, %51, %52 in 1 : vector<40x256xf32>, vector<40x256xf32>, vector<40x256xf32> -> vector<40x768xf32>
    %54 = arith.truncf %53 : vector<40x768xf32> to vector<40x768xbf16>
    %c0_57 = arith.constant 0 : index
    %c0_58 = arith.constant 0 : index
    %55 = vector.load %arg7[%c0_57, %c0_58] : memref<768x128xbf16, #tpu.memory_space<vmem>>, vector<768x128xbf16>
    %cst_59 = arith.constant dense<0.000000e+00> : vector<40x128xf32>
    %56 = tpu.matmul %54, %55, %cst_59 {dimension_numbers = #tpu.dot_dimension_numbers<[1], [0], [0], [1], [0, 0, 1, 1], [], []>} : vector<40x768xbf16>, vector<768x128xbf16>, vector<40x128xf32> -> vector<40x128xf32>
    %c0_60 = arith.constant 0 : index
    %c0_61 = arith.constant 0 : index
    %57 = vector.load %arg8[%c0_60, %c0_61] : memref<1x128xf32, #tpu.memory_space<vmem>>, vector<1x128xf32>
    %58 = vector.broadcast %57 : vector<1x128xf32> to vector<40x128xf32>
    %59 = arith.addf %56, %58 : vector<40x128xf32>
    %cst_62 = arith.constant 0.000000e+00 : f32
    %60 = vector.broadcast %cst_62 : f32 to vector<40x128xf32>
    %61 = arith.maximumf %59, %60 : vector<40x128xf32>
    %62 = vector.extract_strided_slice %61 {offsets = [0, 0], sizes = [16, 128], strides = [1, 1]} : vector<40x128xf32> to vector<16x128xf32>
    %cst_63 = arith.constant dense<0.000000e+00> : vector<128xf32>
    %63 = vector.multi_reduction <add>, %62, %cst_63 [0] : vector<16x128xf32> to vector<128xf32>
    %64 = vector.shape_cast %63 : vector<128xf32> to vector<1x128xf32>
    %cst_64 = arith.constant 1.600000e+01 : f32
    %65 = vector.broadcast %cst_64 : f32 to vector<1x128xf32>
    %66 = arith.divf %64, %65 : vector<1x128xf32>
    %67 = vector.extract_strided_slice %61 {offsets = [24, 0], sizes = [16, 128], strides = [1, 1]} : vector<40x128xf32> to vector<16x128xf32>
    %cst_65 = arith.constant dense<0.000000e+00> : vector<128xf32>
    %68 = vector.multi_reduction <add>, %67, %cst_65 [0] : vector<16x128xf32> to vector<128xf32>
    %69 = vector.shape_cast %68 : vector<128xf32> to vector<1x128xf32>
    %cst_66 = arith.constant 1.600000e+01 : f32
    %70 = vector.broadcast %cst_66 : f32 to vector<1x128xf32>
    %71 = arith.divf %69, %70 : vector<1x128xf32>
    %72 = tpu.concatenate %66, %71 in 0 : vector<1x128xf32>, vector<1x128xf32> -> vector<2x128xf32>
    %c0_67 = arith.constant 0 : index
    %c0_68 = arith.constant 0 : index
    %73 = vector.load %arg9[%c0_67, %c0_68] : memref<128x20xf32, #tpu.memory_space<vmem>>, vector<128x20xf32>
    %cst_69 = arith.constant dense<0.000000e+00> : vector<2x20xf32>
    %74 = tpu.matmul %72, %73, %cst_69 {dimension_numbers = #tpu.dot_dimension_numbers<[1], [0], [0], [1], [0, 0, 1, 1], [], []>} : vector<2x128xf32>, vector<128x20xf32>, vector<2x20xf32> -> vector<2x20xf32>
    %c0_70 = arith.constant 0 : index
    %c0_71 = arith.constant 0 : index
    %75 = vector.load %arg10[%c0_70, %c0_71] : memref<1x20xf32, #tpu.memory_space<vmem>>, vector<1x20xf32>
    %76 = vector.broadcast %75 : vector<1x20xf32> to vector<2x20xf32>
    %77 = arith.addf %74, %76 : vector<2x20xf32>
    %cst_72 = arith.constant dense<0xFF800000> : vector<2xf32>
    %78 = vector.multi_reduction <maximumf>, %77, %cst_72 [1] : vector<2x20xf32> to vector<2xf32>
    %79 = vector.shape_cast %78 : vector<2xf32> to vector<2x1xf32>
    %80 = vector.broadcast %79 : vector<2x1xf32> to vector<2x20xf32>
    %81 = arith.subf %77, %80 : vector<2x20xf32>
    %82 = math.exp %81 : vector<2x20xf32>
    %cst_73 = arith.constant dense<0.000000e+00> : vector<2xf32>
    %83 = vector.multi_reduction <add>, %82, %cst_73 [1] : vector<2x20xf32> to vector<2xf32>
    %84 = vector.shape_cast %83 : vector<2xf32> to vector<2x1xf32>
    %85 = math.log %84 : vector<2x1xf32>
    %86 = vector.broadcast %85 : vector<2x1xf32> to vector<2x20xf32>
    %87 = arith.subf %81, %86 : vector<2x20xf32>
    %c0_74 = arith.constant 0 : index
    %c0_75 = arith.constant 0 : index
    %88 = vector.load %arg11[%c0_74, %c0_75] : memref<2x20xf32, #tpu.memory_space<vmem>>, vector<2x20xf32>
    tpu.vector_store %arg11[%c0_74, %c0_75], %87 {strides = array<i32>} : memref<2x20xf32, #tpu.memory_space<vmem>>, vector<2x20xf32>,
    return
  }
  func.func @transform_0(%arg0: i32) -> (i32, i32, i32) {
    %c0_i32 = arith.constant 0 : i32
    %c0_i32_0 = arith.constant 0 : i32
    %c0_i32_1 = arith.constant 0 : i32
    return %arg0, %c0_i32, %c0_i32_0 : i32, i32, i32
  }
  func.func @transform_1(%arg0: i32) -> (i32, i32) {
    %c0_i32 = arith.constant 0 : i32
    %c0_i32_0 = arith.constant 0 : i32
    %c0_i32_1 = arith.constant 0 : i32
    return %c0_i32, %c0_i32_0 : i32, i32
  }
  func.func @transform_2(%arg0: i32) -> (i32, i32) {
    %c0_i32 = arith.constant 0 : i32
    %c0_i32_0 = arith.constant 0 : i32
    %c0_i32_1 = arith.constant 0 : i32
    return %c0_i32, %c0_i32_0 : i32, i32
  }
  func.func @transform_3(%arg0: i32) -> (i32, i32) {
    %c0_i32 = arith.constant 0 : i32
    %c0_i32_0 = arith.constant 0 : i32
    %c0_i32_1 = arith.constant 0 : i32
    return %c0_i32, %c0_i32_0 : i32, i32
  }
  func.func @transform_4(%arg0: i32) -> (i32, i32) {
    %c0_i32 = arith.constant 0 : i32
    %c0_i32_0 = arith.constant 0 : i32
    %c0_i32_1 = arith.constant 0 : i32
    return %c0_i32, %c0_i32_0 : i32, i32
  }
  func.func @transform_5(%arg0: i32) -> (i32, i32) {
    %c0_i32 = arith.constant 0 : i32
    %c0_i32_0 = arith.constant 0 : i32
    %c0_i32_1 = arith.constant 0 : i32
    return %c0_i32, %c0_i32_0 : i32, i32
  }
  func.func @transform_6(%arg0: i32) -> (i32, i32) {
    %c0_i32 = arith.constant 0 : i32
    %c0_i32_0 = arith.constant 0 : i32
    %c0_i32_1 = arith.constant 0 : i32
    return %c0_i32, %c0_i32_0 : i32, i32
  }
  func.func @transform_7(%arg0: i32) -> (i32, i32) {
    %c0_i32 = arith.constant 0 : i32
    %c0_i32_0 = arith.constant 0 : i32
    %c0_i32_1 = arith.constant 0 : i32
    return %c0_i32, %c0_i32_0 : i32, i32
  }
  func.func @transform_8(%arg0: i32) -> (i32, i32) {
    %c0_i32 = arith.constant 0 : i32
    %c0_i32_0 = arith.constant 0 : i32
    %c0_i32_1 = arith.constant 0 : i32
    return %c0_i32, %c0_i32_0 : i32, i32
  }
  func.func @transform_9(%arg0: i32) -> (i32, i32) {
    %c0_i32 = arith.constant 0 : i32
    %c0_i32_0 = arith.constant 0 : i32
    %c0_i32_1 = arith.constant 0 : i32
    return %c0_i32, %c0_i32_0 : i32, i32
  }
  func.func @transform_10(%arg0: i32) -> (i32, i32) {
    %c0_i32 = arith.constant 0 : i32
    %c0_i32_0 = arith.constant 0 : i32
    return %arg0, %c0_i32 : i32, i32
  }
}

</mosaic_0001>

<bundles_post_ra>
// kernel: fcn1d_forward.1
= control target key start
LH: loop header
LB: loop body
LE: loop exit
PB: predicated region body
PF: predicated region fallthrough
CT: control target
= control target key end

     0   :  { %15 = vsyncpa [#allocation6], 0  ;;  %s3498_s0 = inlined_call_operand.vmem [shape: f32[2,16,16], index: 0, kind: input, shape index: {}]   ;;  %s3499_s1 = inlined_call_operand.vmem [shape: f32[40,1], index: 1, kind: input, shape index: {}]   ;;  %s3500_s2 = inlined_call_operand.vmem [shape: bf16[128,128], index: 2, kind: input, shape index: {}]   ;;  %s3501_s3 = inlined_call_operand.vmem [shape: f32[1,128], index: 3, kind: input, shape index: {}]   ;;  %s3502_s4 = inlined_call_operand.hbm [shape: bf16[640,256], index: 4, kind: input, shape index: {}]   ;;  %s3503_s5 = inlined_call_operand.vmem [shape: f32[1,256], index: 5, kind: input, shape index: {}]   ;;  %s3504_s6 = inlined_call_operand.hbm [shape: bf16[768,128], index: 6, kind: input, shape index: {}]   ;;  %s3505_s7 = inlined_call_operand.vmem [shape: f32[1,128], index: 7, kind: input, shape index: {}]   ;;  %s3506_s8 = inlined_call_operand.vmem [shape: f32[128,20], index: 8, kind: input, shape index: {}]   ;;  %s3507_s9 = inlined_call_operand.vmem [shape: f32[1,20], index: 9, kind: input, shape index: {}]   ;;  %s3508_s10 = inlined_call_operand.hbm [shape: f32[2,20], index: 10, kind: output, shape index: {}]  }
   0x1   :  { %16 = vsyncpa [#allocation9], 0 }
   0x2   :  { %17 = vsyncpa [#allocation7], 0  ;;  %s2987_s13 = smov [#allocation5]   ;;  %s2915_s17 = scalar_lea.hbm %s3502_s4, 10240 }
   0x3   :  { %s31_s14 = sshll.u32 %s2987_s13, 4  ;;  %p2916_p0 = scmp.ne.s32.totalorder %s3502_s4, %s2915_s17  ;;  %s32_s14 = int_to_ptr.vmem [resolvable:$true] %s31_s14 }
   0x4   :  { %p2919_p1 = scmp.lt.u32.totalorder %s2915_s17, %s3502_s4 }
   0x6   :  { %p2921_p2 = pnand %p2919_p1, %p2916_p0 }
   0x8   :  { %2924 = shalt.err (!%p2921_p2)
}
   0x9   :  { %s2925_s22 = scalar_lea.vmem %s32_s14, 10240  ;;  %p2930_p4 = scmp.lt.s32.totalorder %s32_s14, %s32_s14 }
   0xa   :  { %p2926_p3 = scmp.ne.s32.totalorder %s32_s14, %s2925_s22  ;;  %p2931_p5 = scmp.lt.s32.totalorder %s2925_s22, %s2925_s22 }
   0xc   :  { %p2932_p6 = por %p2931_p5, %p2930_p4 }
   0xe   :  { %p2933_p7 = pnand %p2932_p6, %p2926_p3 }
  0x10   :  { %2936 = shalt.err (!%p2933_p7)
}
  0x11   :  { %s2988_s23 = smov 128   ;;  %s2989_s24 = smov 8  }
  0x12   :  { %37 = dma.hbm_to_vmem [thread:$0]  %s3502_s4, 10240, %s32_s14, [#allocation6], %s2988_s23, %s2988_s23, %s2989_s24  }
  0x13   :  { %s2990_s27 = smov [#allocation8]   ;;  %s2937_s11 = scalar_lea.hbm %s3504_s6, 6144 }
  0x14   :  { %s45_s28 = sshll.u32 %s2990_s27, 4  ;;  %p2938_p8 = scmp.ne.s32.totalorder %s3504_s6, %s2937_s11  ;;  %s46_s28 = int_to_ptr.vmem [resolvable:$true] %s45_s28 }
  0x15   :  { %p2941_p9 = scmp.lt.u32.totalorder %s2937_s11, %s3504_s6 }
  0x17   :  { %p2943_p10 = pnand %p2941_p9, %p2938_p8 }
  0x19   :  { %2946 = shalt.err (!%p2943_p10)
}
  0x1a   :  { %s2947_s17 = scalar_lea.vmem %s46_s28, 6144  ;;  %p2952_p12 = scmp.lt.s32.totalorder %s46_s28, %s46_s28 }
  0x1b   :  { %p2948_p11 = scmp.ne.s32.totalorder %s46_s28, %s2947_s17  ;;  %p2953_p13 = scmp.lt.s32.totalorder %s2947_s17, %s2947_s17 }
  0x1d   :  { %p2954_p0 = por %p2953_p13, %p2952_p12 }
  0x1f   :  { %p2955_p1 = pnand %p2954_p0, %p2948_p11 }
  0x21   :  { %2958 = shalt.err (!%p2955_p1)
}
  0x22   :  { %s2991_s4 = smov 64   ;;  %s2992_s14 = smov 4  }
  0x23   :  { %51 = dma.hbm_to_vmem [thread:$0]  %s3504_s6, 6144, %s46_s28, [#allocation9], %s2991_s4, %s2991_s4, %s2992_s14  }
  0x24   :  { %2981 = dma.done.wait [#allocation6], 10240  }
  0x25   :  { %2982 = vsyncadd [#allocation6], 4294957056 }
  0x26   :  { %2983 = dma.done.wait [#allocation9], 6144  }
  0x27   :  { %2984 = vsyncadd [#allocation9], 4294961152  ;;  %vm70_vm0 = vcmask 130048   ;;  %v2993_v0 = vmov 0.0   ;;  %v78_v1 = vld [vmem:[%s3498_s0] sm:$0xff]  ;;  %v79_v2 = vld [vmem:[%s3498_s0 + $0x8] sm:$0xff] }
  0x28   :  { %71 = vst.msk [vmem:[#allocation2] sm:$0xff] %vm70_vm0, %v2993_v0  ;;  %72 = vst.msk [vmem:[#allocation2 + $0x8] sm:$0xff] %vm70_vm0, %v2993_v0  ;;  %2524 = vmatprep.subr.bf16.mxu0 %v2993_v0  ;;  %v2253_v3 = vld [vmem:[%s3498_s0 + $0x10] sm:$0xff]  ;;  %v2254_v4 = vld [vmem:[%s3498_s0 + $0x18] sm:$0xff]  ;;  %s2994_s0 = smov 16   ;;  %s2995_s13 = smov 48  }
  0x29   :  { %73 = vst.msk [vmem:[#allocation2 + $0x10] sm:$0xff] %vm70_vm0, %v2993_v0  ;;  %74 = vst.msk [vmem:[#allocation2 + $0x18] sm:$0xff] %vm70_vm0, %v2993_v0  ;;  %v2734_v5 = vld [vmem:[%s3500_s2] sm:$0xff]   ;;  %v2735_v6 = vld [vmem:[%s3500_s2 + $0x8] sm:$0xff]   ;;  %vm2996_vm1 = vmmov 0   ;;  %s2997_s17 = smov 32  }
  0x2a   :  { %75 = vst.msk [vmem:[#allocation2 + $0x20] sm:$0xff] %vm70_vm0, %v2993_v0  ;;  %76 = vst.msk [vmem:[#allocation2 + $0x28] sm:$0xff] %vm70_vm0, %v2993_v0  ;;  %2525 = vmatpush3.bf16.msra.mxu0 %v2734_v5  ;;  %v2736_v7 = vld [vmem:[%s3500_s2 + $0x10] sm:$0xff]   ;;  %v2737_v22 = vld [vmem:[%s3500_s2 + $0x18] sm:$0xff]   ;;  %2540 = vmatprep.mubr.msk.bf16.mxu0 %vm2996_vm1, %v2993_v0  ;;  %s2998_s19 = smov 80   ;;  %s2999_s21 = smov 96  }
  0x2b   :  { %77 = vst.msk [vmem:[#allocation2 + $0x30] sm:$0xff] %vm70_vm0, %v2993_v0  ;;  %473 = vst [vmem:[#allocation3] sm:$0xff] %v2993_v0  ;;  %2526 = vmatprep.subr.bf16.mxu0 %v2993_v0  ;;  %v2738_v29 = vld [vmem:[%s3500_s2 + $0x20] sm:$0xff]   ;;  %v2739_v34 = vld [vmem:[%s3500_s2 + $0x28] sm:$0xff]   ;;  %s3000_s22 = smov 112   ;;  %v3001_v59 = vmov 0  }
  0x2c   :  { %479 = vst [vmem:[#allocation3 + $0x30] sm:$0xff] %v2993_v0  ;;  %1220 = vst [vmem:[#allocation4] sm:$0xff] %v2993_v0  ;;  %v2740_v45 = vld [vmem:[%s3500_s2 + $0x30] sm:$0xff]   ;;  %v2741_v48 = vld [vmem:[%s3500_s2 + $0x38] sm:$0xff]   ;;  %2732 = vset.pattern.permute.xlu1 %v3001_v59  ;;  %2733 = vset.pattern.permute.xlu0 %v3001_v59  ;;  %vm272_vm2 = vcmask 261120   ;;  %vm278_vm3 = vcmask 392192  }
  0x2d   :  { %1221 = vst [vmem:[#allocation4 + $0x8] sm:$0xff] %v2993_v0  ;;  %1232 = vst [vmem:[#allocation4 + $0x60] sm:$0xff] %v2993_v0  ;;  %v2742_v60 = vld [vmem:[#allocation5 + $0x4] ss:$8 sps:$4 sm:$0xff]   ;;  %v2744_v61 = vld [vmem:[#allocation5] ss:$8 sps:$4 sm:$0xff]  }
  0x2e   :  { %1233 = vst [vmem:[#allocation4 + $0x68] sm:$0xff] %v2993_v0  ;;  %80 = vst.msk [vmem:[#allocation2 + $0x8] sm:$0xff] %vm70_vm0, %v78_v1  ;;  %2527 = vmatpush3.bf16.msra.mxu0 %v2735_v6  ;;  %v2745_v62 = vld [vmem:[#allocation5 + $0x14] ss:$8 sps:$4 sm:$0xff]   ;;  %1017 = vmatprep.subr.bf16.mxu1 %v2742_v60  ;;  %v65_v5 = vld [vmem:[%s3499_s1] sm:$0xff]  ;;  %vm284_vm4 = vcmask 523264  }
  0x2f   :  { %81 = vst.msk [vmem:[#allocation2 + $0x10] sm:$0xff] %vm70_vm0, %v79_v2  ;;  %85 = vst.msk [vmem:[#allocation2 + $0x20] sm:$0xff] %vm70_vm0, %v2253_v3  ;;  %2528 = vmatprep.subr.bf16.mxu0 %v2993_v0  ;;  %1018 = vmatpush1.bf16.msra.mxu1 %v2744_v61  ;;  %v2747_v2 = vld [vmem:[#allocation5 + $0x10] ss:$8 sps:$4 sm:$0xff]   ;;  %v2748_v3 = vld [vmem:[#allocation5 + $0x24] ss:$8 sps:$4 sm:$0xff]  }
  0x30   :  { %86 = vst.msk [vmem:[#allocation2 + $0x28] sm:$0xff] %vm70_vm0, %v2254_v4  ;;  %v104_v33 = vld [vmem:[#allocation2 + $0x18] sm:$0xff]  ;;  %1019 = vmatprep.subr.bf16.mxu1 %v2745_v62  ;;  %v2750_v6 = vld [vmem:[#allocation5 + $0x20] ss:$8 sps:$4 sm:$0xff]   ;;  %vm290_vm5 = vcmask 654336   ;;  %vm296_vm6 = vcmask 785408  }
  0x31   :  { %vm302_vm7 = vcmask 916480   ;;  %vm1280_vm8 = vcmask 1046528   ;;  %vm1479_vm9 = vsmask.f32 4352  ;;  %vm1323_vm10 = vcmask 1045504  }
  0x32   :  { %2529 = vmatpush3.bf16.msra.mxu0 %v2736_v7  ;;  %v2751_v7 = vld [vmem:[#allocation5 + $0x34] ss:$8 sps:$4 sm:$0xff]   ;;  %vm2128_vm11 = vcmask 1040384   ;;  %vm2223_vm12 = vcmask 156672  }
  0x33   :  { %2530 = vmatprep.subr.bf16.mxu0 %v2993_v0  ;;  %1020 = vmatpush1.bf16.msra.mxu1 %v2747_v2 }
  0x34   :  { %1021 = vmatprep.subr.bf16.mxu1 %v2748_v3 }
  0x35   :  { %v92_v8 = vld [vmem:[#allocation2 + $0x6] sm:$0xff] }
  0x36   :  { %v93_v9 = vld [vmem:[#allocation2 + $0xe] sm:$0xff]  ;;  %2531 = vmatpush3.bf16.msra.mxu0 %v2737_v22  ;;  %v94_v30 = vld [vmem:[#allocation2 + $0x16] sm:$0xff]  ;;  %v95_v31 = vld [vmem:[#allocation2 + $0x1e] sm:$0xff] }
  0x37   :  { %v102_v10 = vld [vmem:[#allocation2 + $0x8] sm:$0xff]  ;;  %v2662_v11 = vpack.i.bf16 %v93_v9, %v92_v8  ;;  %v103_v12 = vld [vmem:[#allocation2 + $0x10] sm:$0xff]  ;;  %2532 = vmatprep.subr.bf16.mxu0 %v2993_v0  ;;  %v2697_v35 = vpack.i.bf16 %v95_v31, %v94_v30  ;;  %v100_v37 = vld [vmem:[#allocation2 + $0x1f] sm:$0xff]  ;;  %1022 = vmatpush1.bf16.msra.mxu1 %v2750_v6 }
  0x38   :  { %v97_v13 = vld [vmem:[#allocation2 + $0x7] sm:$0xff]  ;;  %v98_v14 = vld [vmem:[#allocation2 + $0xf] sm:$0xff]  ;;  %v2672_v15 = vpack.i.bf16 %v103_v12, %v102_v10  ;;  %v99_v36 = vld [vmem:[#allocation2 + $0x17] sm:$0xff]  ;;  %1023 = vmatprep.subr.bf16.mxu1 %v2751_v7 }
  0x39   :  { %v107_v16 = vld [vmem:[#allocation2 + $0x9] sm:$0xff]  ;;  %v108_v17 = vld [vmem:[#allocation2 + $0x11] sm:$0xff]  ;;  %2663 = vrot.lane.b32.xlu0 %v2662_v11, %s2994_s0  ;;  %v2667_v18 = vpack.i.bf16 %v98_v14, %v97_v13  ;;  %v105_v38 = vld [vmem:[#allocation2 + $0x20] sm:$0xff]  ;;  %v2702_v41 = vpack.i.bf16 %v100_v37, %v99_v36 }
  0x3a   :  { %2673 = vrot.lane.b32.xlu1 %v2672_v15, %s2995_s13  ;;  %v2677_v19 = vpack.i.bf16 %v108_v17, %v107_v16  ;;  %v112_v20 = vld [vmem:[#allocation2 + $0xa] sm:$0xff]  ;;  %v113_v21 = vld [vmem:[#allocation2 + $0x12] sm:$0xff]  ;;  %2533 = vmatpush3.bf16.msra.mxu0 %v2738_v29  ;;  %v110_v40 = vld [vmem:[#allocation2 + $0x21] sm:$0xff]  ;;  %v2707_v44 = vpack.i.bf16 %v105_v38, %v104_v33 }
  0x3b   :  { %v117_v23 = vld [vmem:[#allocation2 + $0xb] sm:$0xff]  ;;  %v118_v24 = vld [vmem:[#allocation2 + $0x13] sm:$0xff]  ;;  %v2682_v25 = vpack.i.bf16 %v113_v21, %v112_v20  ;;  %2534 = vmatprep.subr.bf16.mxu0 %v2993_v0  ;;  %v115_v43 = vld [vmem:[#allocation2 + $0x22] sm:$0xff] }
  0x3c   :  { %v2687_v26 = vpack.i.bf16 %v118_v24, %v117_v23  ;;  %v122_v27 = vld [vmem:[#allocation2 + $0xc] sm:$0xff]  ;;  %v123_v28 = vld [vmem:[#allocation2 + $0x14] sm:$0xff]  ;;  %v120_v47 = vld [vmem:[#allocation2 + $0x23] sm:$0xff] }
  0x3d   :  { %2668 = vrot.lane.b32.xlu0 %v2667_v18, %s2997_s17  ;;  %v2692_v32 = vpack.i.bf16 %v123_v28, %v122_v27  ;;  %v109_v39 = vld [vmem:[#allocation2 + $0x19] sm:$0xff]  ;;  %v125_v51 = vld [vmem:[#allocation2 + $0x24] sm:$0xff]  ;;  %v126_v4 = vld [vmem:[#allocation2 + $0x2c] sm:$0xff] }
  0x3e   :  { %2678 = vrot.lane.b32.xlu1 %v2677_v19, %s2991_s4  ;;  %v114_v42 = vld [vmem:[#allocation2 + $0x1a] sm:$0xff]  ;;  %2535 = vmatpush3.bf16.msra.mxu0 %v2739_v34  ;;  %v2712_v49 = vpack.i.bf16 %v110_v40, %v109_v39  ;;  %v96_v55 = vld [vmem:[#allocation2 + $0x26] sm:$0xff]  ;;  %v67_v9 = vld [vmem:[%s3499_s1 + $0x10] sm:$0xff] }
  0x3f   :  { %2536 = vmatprep.subr.bf16.mxu0 %v2993_v0  ;;  %v119_v46 = vld [vmem:[#allocation2 + $0x1b] sm:$0xff]  ;;  %v2717_v52 = vpack.i.bf16 %v115_v43, %v114_v42  ;;  %v101_v56 = vld [vmem:[#allocation2 + $0x27] sm:$0xff] }
  0x40   :  { %v124_v50 = vld [vmem:[#allocation2 + $0x1c] sm:$0xff]  ;;  %v2722_v53 = vpack.i.bf16 %v120_v47, %v119_v46  ;;  %v106_v57 = vld [vmem:[#allocation2 + $0x28] sm:$0xff]  ;;  %v2753_v10 = vld [vmem:[#allocation5 + $0x30] ss:$8 sps:$4 sm:$0xff]  }
  0x41   :  { %2683 = vrot.lane.b32.xlu0 %v2682_v25, %s2998_s19  ;;  %v2727_v54 = vpack.i.bf16 %v125_v51, %v124_v50  ;;  %v111_v58 = vld [vmem:[#allocation2 + $0x29] sm:$0xff]  ;;  %v69_v12 = vld [vmem:[%s3499_s1 + $0x20] sm:$0xff]  ;;  %v68_v13 = vld [vmem:[%s3499_s1 + $0x18] sm:$0xff]  ;;  %1024 = vmatpush1.bf16.msra.mxu1 %v2753_v10 }
  0x42   :  { %2688 = vrot.lane.b32.xlu1 %v2687_v26, %s2999_s21  ;;  %2537 = vmatpush3.bf16.msra.mxu0 %v2740_v45  ;;  %v116_v63 = vld [vmem:[#allocation2 + $0x2a] sm:$0xff]  ;;  %v2757_v15 = vld [vmem:[#allocation5 + $0x54] ss:$8 sps:$4 sm:$0xff]  }
  0x43   :  { %2538 = vmatprep.subr.bf16.mxu0 %v2993_v0  ;;  %v121_v1 = vld [vmem:[#allocation2 + $0x2b] sm:$0xff]  ;;  %v2763_v19 = vld [vmem:[#allocation5 + $0x74] ss:$8 sps:$4 sm:$0xff]  }
  0x44   :  { %v66_v8 = vld [vmem:[%s3499_s1 + $0x8] sm:$0xff]  ;;  %v2759_v16 = vld [vmem:[#allocation5 + $0x50] ss:$8 sps:$4 sm:$0xff]   ;;  %v2769_v23 = vld [vmem:[#allocation5 + $0x94] ss:$8 sps:$4 sm:$0xff]  }
  0x45   :  { %2693 = vrot.lane.b32.xlu0 %v2692_v32, %s3000_s22  ;;  %v2754_v11 = vld [vmem:[#allocation5 + $0x44] ss:$8 sps:$4 sm:$0xff]   ;;  %v2756_v14 = vld [vmem:[#allocation5 + $0x40] ss:$8 sps:$4 sm:$0xff]   ;;  %v2765_v20 = vld [vmem:[#allocation5 + $0x70] ss:$8 sps:$4 sm:$0xff]  }
  0x46   :  { %2698 = vrot.lane.b32.xlu1 %v2697_v35, %s2994_s0  ;;  %2539 = vmatpush3.bf16.msra.mxu0 %v2741_v48  ;;  %v2760_v17 = vld [vmem:[#allocation5 + $0x64] ss:$8 sps:$4 sm:$0xff]   ;;  %v2762_v18 = vld [vmem:[#allocation5 + $0x60] ss:$8 sps:$4 sm:$0xff]   ;;  %v2771_v24 = vld [vmem:[#allocation5 + $0x90] ss:$8 sps:$4 sm:$0xff]  }
  0x47   :  { %1025 = vmatprep.subr.bf16.mxu1 %v2754_v11  ;;  %v2766_v21 = vld [vmem:[#allocation5 + $0x84] ss:$8 sps:$4 sm:$0xff]   ;;  %v2768_v22 = vld [vmem:[#allocation5 + $0x80] ss:$8 sps:$4 sm:$0xff]   ;;  %v2775_v27 = vld [vmem:[#allocation5 + $0xb4] ss:$8 sps:$4 sm:$0xff]  }
  0x48   :  { %1026 = vmatpush1.bf16.msra.mxu1 %v2756_v14  ;;  %v2772_v25 = vld [vmem:[#allocation5 + $0xa4] ss:$8 sps:$4 sm:$0xff]   ;;  %v2774_v26 = vld [vmem:[#allocation5 + $0xa0] ss:$8 sps:$4 sm:$0xff]   ;;  %v89_v62 = vld [vmem:[#allocation2 + $0x15] sm:$0xff] }
  0x49   :  { %2703 = vrot.lane.b32.xlu0 %v2702_v41, %s2997_s17  ;;  %1027 = vmatprep.subr.bf16.mxu1 %v2757_v15  ;;  %v88_v32 = vld [vmem:[#allocation2 + $0xd] sm:$0xff]  ;;  %v87_v33 = vld [vmem:[#allocation2 + $0x5] sm:$0xff] }
  0x4a   :  { %2708 = vrot.lane.b32.xlu1 %v2707_v44, %s2995_s13 }
  0x4c   :  { %1028 = vmatpush1.bf16.msra.mxu1 %v2759_v16 }
  0x4d   :  { %2713 = vrot.lane.b32.xlu0 %v2712_v49, %s2991_s4  ;;  %1029 = vmatprep.subr.bf16.mxu1 %v2760_v17 }
  0x4e   :  { %2718 = vrot.lane.b32.xlu1 %v2717_v52, %s2998_s19 }
  0x50   :  { %1030 = vmatpush1.bf16.msra.mxu1 %v2762_v18 }
  0x51   :  { %2723 = vrot.lane.b32.xlu0 %v2722_v53, %s2999_s21  ;;  %1031 = vmatprep.subr.bf16.mxu1 %v2763_v19 }
  0x52   :  { %2728 = vrot.lane.b32.xlu1 %v2727_v54, %s3000_s22 }
  0x54   :  { %1032 = vmatpush1.bf16.msra.mxu1 %v2765_v20 }
  0x55   :  { %140 = vrot.lane.b32.xlu0 %v96_v55, %s2994_s0  ;;  %1033 = vmatprep.subr.bf16.mxu1 %v2766_v21 }
  0x56   :  { %160 = vrot.lane.b32.xlu1 %v101_v56, %s2997_s17 }
  0x58   :  { %1034 = vmatpush1.bf16.msra.mxu1 %v2768_v22 }
  0x59   :  { %180 = vrot.lane.b32.xlu0 %v106_v57, %s2995_s13  ;;  %1035 = vmatprep.subr.bf16.mxu1 %v2769_v23 }
  0x5a   :  { %200 = vrot.lane.b32.xlu1 %v111_v58, %s2991_s4 }
  0x5c   :  { %1036 = vmatpush1.bf16.msra.mxu1 %v2771_v24 }
  0x5d   :  { %220 = vrot.lane.b32.xlu0 %v116_v63, %s2998_s19  ;;  %1037 = vmatprep.subr.bf16.mxu1 %v2772_v25  ;;  %v90_v63 = vld [vmem:[#allocation2 + $0x1d] sm:$0xff] }
  0x5e   :  { %240 = vrot.lane.b32.xlu1 %v121_v1, %s2999_s21  ;;  %s3003_s21 = smov [#allocation10]  }
  0x60   :  { %1038 = vmatpush1.bf16.msra.mxu1 %v2774_v26 }
  0x61   :  { %260 = vrot.lane.b32.xlu0 %v126_v4, %s3000_s22  ;;  %1039 = vmatprep.subr.bf16.mxu1 %v2775_v27 }
  0x62   :  { %445 = vperm.xlu1 %2732, %v65_v5  }
  0x65   :  { %450 = vperm.xlu0 %2733, %v66_v8  }
  0x66   :  { %455 = vperm.xlu1 %2732, %v67_v9  }
  0x69   :  { %465 = vperm.xlu0 %2733, %v69_v12  }
  0x6a   :  { %460 = vperm.xlu1 %2732, %v68_v13  }
  0xab   :  { %v2664_v28 = vpop.permute.xlu0 %2663 }
  0xac   :  { %v2674_v29 = vpop.permute.xlu1 %2673  ;;  %v2666_v30 = vunpack.i.h.bf16 %v2664_v28  ;;  %v2665_v31 = vunpack.i.l.bf16 %v2664_v28 }
  0xad   :  { %v2676_v35 = vunpack.i.h.bf16 %v2674_v29  ;;  %v2675_v36 = vunpack.i.l.bf16 %v2674_v29 }
  0xae   :  { %v268_v40 = vsel %vm70_vm0, %v88_v32, %v2666_v30  ;;  %v267_v41 = vsel %vm70_vm0, %v87_v33, %v2665_v31 }
  0xaf   :  { %v2669_v34 = vpop.permute.xlu0 %2668 }
  0xb0   :  { %v2671_v37 = vunpack.i.h.bf16 %v2669_v34  ;;  %v2670_v38 = vunpack.i.l.bf16 %v2669_v34  ;;  %v2679_v39 = vpop.permute.xlu1 %2678 }
  0xb1   :  { %v2681_v42 = vunpack.i.h.bf16 %v2679_v39  ;;  %v2680_v43 = vunpack.i.l.bf16 %v2679_v39 }
  0xb2   :  { %v273_v44 = vsel %vm272_vm2, %v267_v41, %v2670_v38  ;;  %v274_v45 = vsel %vm272_vm2, %v268_v40, %v2671_v37  ;;  %v91_v37 = vld [vmem:[#allocation2 + $0x25] sm:$0xff] }
  0xb3   :  { %v279_v46 = vsel %vm278_vm3, %v273_v44, %v2675_v36  ;;  %v280_v47 = vsel %vm278_vm3, %v274_v45, %v2676_v35  ;;  %v2684_v48 = vpop.permute.xlu0 %2683 }
  0xb4   :  { %v285_v49 = vsel %vm284_vm4, %v279_v46, %v2680_v43  ;;  %v286_v50 = vsel %vm284_vm4, %v280_v47, %v2681_v42  ;;  %v2686_v51 = vunpack.i.h.bf16 %v2684_v48  ;;  %v2685_v52 = vunpack.i.l.bf16 %v2684_v48  ;;  %v2689_v53 = vpop.permute.xlu1 %2688 }
  0xb5   :  { %v2691_v54 = vunpack.i.h.bf16 %v2689_v53  ;;  %v2690_v55 = vunpack.i.l.bf16 %v2689_v53 }
  0xb6   :  { %v291_v56 = vsel %vm290_vm5, %v285_v49, %v2685_v52  ;;  %v292_v57 = vsel %vm290_vm5, %v286_v50, %v2686_v51 }
  0xb7   :  { %v2694_v58 = vpop.permute.xlu0 %2693  ;;  %v297_v2 = vsel %vm296_vm6, %v291_v56, %v2690_v55  ;;  %v298_v3 = vsel %vm296_vm6, %v292_v57, %v2691_v54 }
  0xb8   :  { %v2696_v60 = vunpack.i.h.bf16 %v2694_v58  ;;  %v2695_v61 = vunpack.i.l.bf16 %v2694_v58  ;;  %v2699_v1 = vpop.permute.xlu1 %2698  ;;  %v2777_v58 = vld [vmem:[#allocation5 + $0xb0] ss:$8 sps:$4 sm:$0xff]  }
  0xb9   :  { %v2701_v4 = vunpack.i.h.bf16 %v2699_v1  ;;  %v2700_v5 = vunpack.i.l.bf16 %v2699_v1  ;;  %1040 = vmatpush1.bf16.msra.mxu1 %v2777_v58  ;;  %v2786_v1 = vld [vmem:[#allocation5 + $0xe0] ss:$8 sps:$4 sm:$0xff]   ;;  %v2804_v58 = vld [vmem:[#allocation5 + $0x144] ss:$8 sps:$4 sm:$0xff]  }
  0xba   :  { %v303_v6 = vsel %vm302_vm7, %v297_v2, %v2695_v61  ;;  %v304_v7 = vsel %vm302_vm7, %v298_v3, %v2696_v60  ;;  %v2778_v60 = vld [vmem:[#allocation5 + $0xc4] ss:$8 sps:$4 sm:$0xff]   ;;  %v2781_v61 = vld [vmem:[#allocation5 + $0xd4] ss:$8 sps:$4 sm:$0xff]   ;;  %v2789_v3 = vld [vmem:[#allocation5 + $0xf0] ss:$8 sps:$4 sm:$0xff]  }
  0xbb   :  { %v270_v8 = vsel %vm70_vm0, %v90_v63, %v2701_v4  ;;  %v269_v9 = vsel %vm70_vm0, %v89_v62, %v2700_v5  ;;  %v2704_v10 = vpop.permute.xlu0 %2703  ;;  %v308_v11 = vpack.c.bf16 %v304_v7, %v303_v6  ;;  %1041 = vmatprep.subr.bf16.mxu1 %v2778_v60  ;;  %v2783_v62 = vld [vmem:[#allocation5 + $0xd0] ss:$8 sps:$4 sm:$0xff]   ;;  %v2784_v63 = vld [vmem:[#allocation5 + $0xe4] ss:$8 sps:$4 sm:$0xff]   ;;  %v2787_v2 = vld [vmem:[#allocation5 + $0xf4] ss:$8 sps:$4 sm:$0xff]  }
  0xbc   :  { %v2706_v12 = vunpack.i.h.bf16 %v2704_v10  ;;  %v2705_v13 = vunpack.i.l.bf16 %v2704_v10  ;;  %v2709_v14 = vpop.permute.xlu1 %2708  ;;  %v2792_v4 = vld [vmem:[#allocation5 + $0x104] ss:$8 sps:$4 sm:$0xff]   ;;  %v2255_v5 = vld [vmem:[%s3501_s3] ss:$0 sm:$0xff] }
  0xbd   :  { %v2711_v15 = vunpack.i.h.bf16 %v2709_v14  ;;  %v2710_v16 = vunpack.i.l.bf16 %v2709_v14  ;;  %2541 = vmatmul.mubr.bf16.vlgmr.msra.gmra.mrb[0].mxu0 %v308_v11 }
  0xbe   :  { %v276_v17 = vsel %vm272_vm2, %v270_v8, %v2706_v12  ;;  %v275_v18 = vsel %vm272_vm2, %v269_v9, %v2705_v13  ;;  %2544 = vmatprep.mubr.msk.bf16.mxu0 %vm2996_vm1, %v2993_v0 }
  0xbf   :  { %v281_v19 = vsel %vm278_vm3, %v275_v18, %v2710_v16  ;;  %v282_v20 = vsel %vm278_vm3, %v276_v17, %v2711_v15  ;;  %v2714_v21 = vpop.permute.xlu0 %2713 }
  0xc0   :  { %v2716_v22 = vunpack.i.h.bf16 %v2714_v21  ;;  %v2715_v23 = vunpack.i.l.bf16 %v2714_v21  ;;  %v2719_v24 = vpop.permute.xlu1 %2718 }
  0xc1   :  { %v2721_v25 = vunpack.i.h.bf16 %v2719_v24  ;;  %v2720_v26 = vunpack.i.l.bf16 %v2719_v24 }
  0xc2   :  { %v287_v27 = vsel %vm284_vm4, %v281_v19, %v2715_v23  ;;  %v288_v28 = vsel %vm284_vm4, %v282_v20, %v2716_v22 }
  0xc3   :  { %v293_v29 = vsel %vm290_vm5, %v287_v27, %v2720_v26  ;;  %v294_v30 = vsel %vm290_vm5, %v288_v28, %v2721_v25  ;;  %v2724_v31 = vpop.permute.xlu0 %2723 }
  0xc4   :  { %v2726_v32 = vunpack.i.h.bf16 %v2724_v31  ;;  %v2725_v33 = vunpack.i.l.bf16 %v2724_v31  ;;  %v2729_v34 = vpop.permute.xlu1 %2728 }
  0xc5   :  { %v2731_v35 = vunpack.i.h.bf16 %v2729_v34  ;;  %v2730_v36 = vunpack.i.l.bf16 %v2729_v34 }
  0xc6   :  { %v299_v38 = vsel %vm296_vm6, %v293_v29, %v2725_v33  ;;  %v300_v39 = vsel %vm296_vm6, %v294_v30, %v2726_v32  ;;  %v2790_v32 = vld [vmem:[#allocation5 + $0x100] ss:$8 sps:$4 sm:$0xff]  }
  0xc7   :  { %v141_v40 = vpop.permute.xlu0 %140  ;;  %v305_v41 = vsel %vm302_vm7, %v299_v38, %v2730_v36  ;;  %v306_v42 = vsel %vm302_vm7, %v300_v39, %v2731_v35  ;;  %v2795_v36 = vld [vmem:[#allocation5 + $0x114] ss:$8 sps:$4 sm:$0xff]   ;;  %v2793_v39 = vld [vmem:[#allocation5 + $0x110] ss:$8 sps:$4 sm:$0xff]  }
  0xc8   :  { %v271_v43 = vsel %vm70_vm0, %v91_v37, %v141_v40  ;;  %v161_v44 = vpop.permute.xlu1 %160  ;;  %v309_v45 = vpack.c.bf16 %v306_v42, %v305_v41  ;;  %v2798_v40 = vld [vmem:[#allocation5 + $0x124] ss:$8 sps:$4 sm:$0xff]   ;;  %v2796_v42 = vld [vmem:[#allocation5 + $0x120] ss:$8 sps:$4 sm:$0xff]  }
  0xc9   :  { %v277_v46 = vsel %vm272_vm2, %v271_v43, %v161_v44  ;;  %v2801_v44 = vld [vmem:[#allocation5 + $0x134] ss:$8 sps:$4 sm:$0xff]  }
  0xca   :  { %2545 = vmatmul.mubr.bf16.gmra.mrb[4].mxu0 %v309_v45 }
  0xcb   :  { %v181_v47 = vpop.permute.xlu0 %180  ;;  %2548 = vmatprep.mubr.msk.bf16.mxu0 %vm2996_vm1, %v2993_v0  ;;  %v2780_v0 = vld [vmem:[#allocation5 + $0xc0] ss:$8 sps:$4 sm:$0xff]  }
  0xcc   :  { %v283_v48 = vsel %vm278_vm3, %v277_v46, %v181_v47  ;;  %v201_v49 = vpop.permute.xlu1 %200  ;;  %1042 = vmatpush1.bf16.msra.mxu1 %v2780_v0  ;;  %v2799_v47 = vld [vmem:[#allocation5 + $0x130] ss:$8 sps:$4 sm:$0xff]   ;;  %v2802_v0 = vld [vmem:[#allocation5 + $0x140] ss:$8 sps:$4 sm:$0xff]  }
  0xcd   :  { %v289_v50 = vsel %vm284_vm4, %v283_v48, %v201_v49  ;;  %1043 = vmatprep.subr.bf16.mxu1 %v2781_v61  ;;  %v2807_v61 = vld [vmem:[#allocation5 + $0x154] ss:$8 sps:$4 sm:$0xff]  }
  0xcf   :  { %v221_v51 = vpop.permute.xlu0 %220 }
  0xd0   :  { %v295_v52 = vsel %vm290_vm5, %v289_v50, %v221_v51  ;;  %v241_v53 = vpop.permute.xlu1 %240  ;;  %1044 = vmatpush1.bf16.msra.mxu1 %v2783_v62  ;;  %v2805_v62 = vld [vmem:[#allocation5 + $0x150] ss:$8 sps:$4 sm:$0xff]  }
  0xd1   :  { %v301_v54 = vsel %vm296_vm6, %v295_v52, %v241_v53  ;;  %1045 = vmatprep.subr.bf16.mxu1 %v2784_v63  ;;  %v2810_v63 = vld [vmem:[#allocation5 + $0x164] ss:$8 sps:$4 sm:$0xff]  }
  0xd3   :  { %v261_v55 = vpop.permute.xlu0 %260 }
  0xd4   :  { %v307_v56 = vsel %vm302_vm7, %v301_v54, %v261_v55  ;;  %1046 = vmatpush1.bf16.msra.mxu1 %v2786_v1 }
  0xd5   :  { %v310_v57 = vpack.c.bf16 %v307_v56, %v307_v56  ;;  %1047 = vmatprep.subr.bf16.mxu1 %v2787_v2 }
  0xd7   :  { %2549 = vmatmul.mubr.bf16.gmra.mrb[8].mxu0 %v310_v57 }
  0xd8   :  { %1048 = vmatpush1.bf16.msra.mxu1 %v2789_v3 }
  0xd9   :  { %1078 = vmatprep.subr.bf16.mxu1 %v2792_v4 }
  0xe1   :  { %v3235_v13 = vpop.permute.xlu1 %445 }
  0xe4   :  { %v3240_v16 = vpop.permute.xlu0 %450 }
  0xe5   :  { %v3249_v19 = vpop.permute.xlu1 %455 }
  0xe8   :  { %v3263_v55 = vpop.permute.xlu0 %465 }
  0xe9   :  { %v3254_v37 = vpop.permute.xlu1 %460 }
 0x190   :  { %v416_v6 = vpop.f32.mrb[0].mxu0 }
 0x191   :  { %v417_v7 = vadd.f32 %v2255_v5, %v416_v6  ;;  %v2542_v8 = vpop.f32.mrb[1].mxu0 }
 0x192   :  { %v419_v9 = vpop.f32.mrb[2].mxu0  ;;  %v2813_v8 = vld [vmem:[#allocation5 + $0x174] ss:$8 sps:$4 sm:$0xff]  }
 0x193   :  { %v438_v10 = vmax.f32 %v417_v7, 0.0  ;;  %v420_v11 = vadd.f32 %v2255_v5, %v419_v9  ;;  %v2543_v12 = vpop.f32.mrb[3].mxu0 }
 0x194   :  { %v2814_v12 = vld [vmem:[#allocation5 + $0x180] ss:$8 sps:$4 sm:$0xff]  }
 0x195   :  { %v3238_v14 = vmul.f32 %v3235_v13, %v438_v10  ;;  %v439_v15 = vmax.f32 %v420_v11, 0.0  ;;  %v2811_v10 = vld [vmem:[#allocation5 + $0x170] ss:$8 sps:$4 sm:$0xff]   ;;  %v2816_v11 = vld [vmem:[#allocation5 + $0x184] ss:$8 sps:$4 sm:$0xff]  }
 0x197   :  { %480 = vst [vmem:[#allocation3 + $0x8] sm:$0xff] %v3238_v14  ;;  %v3244_v17 = vmul.f32 %v3240_v16, %v439_v15  ;;  %v2819_v15 = vld [vmem:[#allocation5 + $0x194] ss:$8 sps:$4 sm:$0xff]  }
 0x199   :  { %481 = vst [vmem:[#allocation3 + $0x10] sm:$0xff] %v3244_v17  ;;  %v512_v18 = vpack.c.bf16 %v3244_v17, %v3238_v14  ;;  %v2852_v14 = vld [vmem:[#allocation5 + $0x244] ss:$8 sps:$4 sm:$0xff]   ;;  %v2850_v17 = vld [vmem:[#allocation5 + $0x240] ss:$8 sps:$4 sm:$0xff]  }
 0x19d   :  { %v424_v20 = vpop.f32.mrb[4].mxu0 }
 0x19e   :  { %v425_v21 = vadd.f32 %v2255_v5, %v424_v20  ;;  %v2546_v22 = vpop.f32.mrb[5].mxu0  ;;  %v490_v24 = vld [vmem:[#allocation3 + $0x7] sm:$0xff]  ;;  %v2817_v20 = vld [vmem:[#allocation5 + $0x190] ss:$8 sps:$4 sm:$0xff]  }
 0x19f   :  { %v427_v23 = vpop.f32.mrb[6].mxu0  ;;  %v485_v28 = vld [vmem:[#allocation3 + $0x6] sm:$0xff] }
 0x1a0   :  { %v440_v25 = vmax.f32 %v425_v21, 0.0  ;;  %v428_v26 = vadd.f32 %v2255_v5, %v427_v23  ;;  %v491_v27 = vld [vmem:[#allocation3 + $0xf] sm:$0xff]  ;;  %v2547_v30 = vpop.f32.mrb[7].mxu0  ;;  %v2825_v23 = vld [vmem:[#allocation5 + $0x1b4] ss:$8 sps:$4 sm:$0xff]  }
 0x1a1   :  { %v486_v29 = vld [vmem:[#allocation3 + $0xe] sm:$0xff]  ;;  %v511_v31 = vpack.c.bf16 %v491_v27, %v490_v24  ;;  %v2823_v24 = vld [vmem:[#allocation5 + $0x1b0] ss:$8 sps:$4 sm:$0xff]   ;;  %v2831_v27 = vld [vmem:[#allocation5 + $0x1d4] ss:$8 sps:$4 sm:$0xff]  }
 0x1a2   :  { %v510_v33 = vpack.c.bf16 %v486_v29, %v485_v28  ;;  %v3252_v34 = vmul.f32 %v3249_v19, %v440_v25  ;;  %v441_v35 = vmax.f32 %v428_v26, 0.0  ;;  %v500_v7 = vld [vmem:[#allocation3 + $0x9] sm:$0xff]  ;;  %v2829_v28 = vld [vmem:[#allocation5 + $0x1d0] ss:$8 sps:$4 sm:$0xff]  }
 0x1a3   :  { %1049 = vmatprep.mubr.bf16.mxu1 %v511_v31  ;;  %v2822_v21 = vld [vmem:[#allocation5 + $0x1a4] ss:$8 sps:$4 sm:$0xff]   ;;  %v2820_v22 = vld [vmem:[#allocation5 + $0x1a0] ss:$8 sps:$4 sm:$0xff]   ;;  %v2837_v31 = vld [vmem:[#allocation5 + $0x1f4] ss:$8 sps:$4 sm:$0xff]  }
 0x1a4   :  { %482 = vst [vmem:[#allocation3 + $0x18] sm:$0xff] %v3252_v34  ;;  %v3258_v38 = vmul.f32 %v3254_v37, %v441_v35  ;;  %1050 = vmatmul.mubr.bf16.vlgmr.msra.gmra.mrb[0].mxu1 %v510_v33  ;;  %v2828_v25 = vld [vmem:[#allocation5 + $0x1c4] ss:$8 sps:$4 sm:$0xff]   ;;  %v2826_v26 = vld [vmem:[#allocation5 + $0x1c0] ss:$8 sps:$4 sm:$0xff]  }
 0x1a5   :  { %1079 = vmatpush1.bf16.msra.mxu1 %v2790_v32  ;;  %v2834_v29 = vld [vmem:[#allocation5 + $0x1e4] ss:$8 sps:$4 sm:$0xff]   ;;  %v2832_v30 = vld [vmem:[#allocation5 + $0x1e0] ss:$8 sps:$4 sm:$0xff]   ;;  %v2835_v32 = vld [vmem:[#allocation5 + $0x1f0] ss:$8 sps:$4 sm:$0xff]  }
 0x1a6   :  { %483 = vst [vmem:[#allocation3 + $0x20] sm:$0xff] %v3258_v38  ;;  %1080 = vmatprep.subr.bf16.mxu1 %v2795_v36  ;;  %v517_v41 = vpack.c.bf16 %v3258_v38, %v3252_v34  ;;  %v2840_v33 = vld [vmem:[#allocation5 + $0x204] ss:$8 sps:$4 sm:$0xff]   ;;  %v2838_v36 = vld [vmem:[#allocation5 + $0x200] ss:$8 sps:$4 sm:$0xff]  }
 0x1a7   :  { %v2858_v34 = vld [vmem:[#allocation5 + $0x264] ss:$8 sps:$4 sm:$0xff]   ;;  %v2856_v38 = vld [vmem:[#allocation5 + $0x260] ss:$8 sps:$4 sm:$0xff]  }
 0x1a9   :  { %1081 = vmatpush1.bf16.msra.mxu1 %v2793_v39 }
 0x1aa   :  { %v432_v43 = vpop.f32.mrb[8].mxu0  ;;  %1082 = vmatprep.subr.bf16.mxu1 %v2798_v40  ;;  %v2843_v40 = vld [vmem:[#allocation5 + $0x214] ss:$8 sps:$4 sm:$0xff]  }
 0x1ab   :  { %v433_v45 = vadd.f32 %v2255_v5, %v432_v43  ;;  %v2550_v46 = vpop.f32.mrb[9].mxu0  ;;  %v492_v48 = vld [vmem:[#allocation3 + $0x17] sm:$0xff]  ;;  %v2808_v5 = vld [vmem:[#allocation5 + $0x160] ss:$8 sps:$4 sm:$0xff]  }
 0x1ac   :  { %v435_v49 = vpop.f32.mrb[10].mxu0  ;;  %v487_v52 = vld [vmem:[#allocation3 + $0x16] sm:$0xff]  ;;  %v2844_v46 = vld [vmem:[#allocation5 + $0x220] ss:$8 sps:$4 sm:$0xff]  }
 0x1ad   :  { %v442_v50 = vmax.f32 %v433_v45, 0.0  ;;  %1083 = vmatpush1.bf16.msra.mxu1 %v2796_v42  ;;  %v493_v51 = vld [vmem:[#allocation3 + $0x1f] sm:$0xff]  ;;  %v2551_v54 = vpop.f32.mrb[11].mxu0  ;;  %v501_v3 = vld [vmem:[#allocation3 + $0x11] sm:$0xff] }
 0x1ae   :  { %v488_v53 = vld [vmem:[#allocation3 + $0x1e] sm:$0xff]  ;;  %1084 = vmatprep.subr.bf16.mxu1 %v2801_v44  ;;  %v516_v56 = vpack.c.bf16 %v493_v51, %v492_v48  ;;  %v513_v9 = vpack.c.bf16 %v501_v3, %v500_v7  ;;  %v2846_v44 = vld [vmem:[#allocation5 + $0x224] ss:$8 sps:$4 sm:$0xff]  }
 0x1af   :  { %v515_v57 = vpack.c.bf16 %v488_v53, %v487_v52  ;;  %v3266_v60 = vmul.f32 %v3263_v55, %v442_v50  ;;  %v502_v39 = vld [vmem:[#allocation3 + $0x19] sm:$0xff]  ;;  %v505_v54 = vld [vmem:[#allocation3 + $0xa] sm:$0xff] }
 0x1b0   :  { %1059 = vmatprep.mubr.bf16.mxu1 %v516_v56  ;;  %v2841_v43 = vld [vmem:[#allocation5 + $0x210] ss:$8 sps:$4 sm:$0xff]   ;;  %v2855_v50 = vld [vmem:[#allocation5 + $0x254] ss:$8 sps:$4 sm:$0xff]   ;;  %v2871_v7 = vld [vmem:[#allocation8 + $0x20] sm:$0xff]  }
 0x1b1   :  { %484 = vst [vmem:[#allocation3 + $0x28] sm:$0xff] %v3266_v60  ;;  %1085 = vmatpush1.bf16.msra.mxu1 %v2799_v47  ;;  %v2849_v47 = vld [vmem:[#allocation5 + $0x234] ss:$8 sps:$4 sm:$0xff]   ;;  %v2847_v49 = vld [vmem:[#allocation5 + $0x230] ss:$8 sps:$4 sm:$0xff]  }
 0x1b2   :  { %1060 = vmatmul.mubr.bf16.gmra.mrb[4].mxu1 %v515_v57  ;;  %1086 = vmatprep.subr.bf16.mxu1 %v2804_v58  ;;  %v2853_v51 = vld [vmem:[#allocation5 + $0x250] ss:$8 sps:$4 sm:$0xff]  }
 0x1b3   :  { %v2859_v52 = vld [vmem:[#allocation5 + $0x270] ss:$8 sps:$4 sm:$0xff]  }
 0x1b4   :  { %v506_v53 = vld [vmem:[#allocation3 + $0x12] sm:$0xff]  ;;  %v507_v58 = vld [vmem:[#allocation3 + $0x1a] sm:$0xff] }
 0x1b5   :  { %1087 = vmatpush1.bf16.msra.mxu1 %v2802_v0  ;;  %v514_v56 = vpack.c.bf16 %v506_v53, %v505_v54  ;;  %v2866_v3 = vld [vmem:[#allocation8 + $0x50] sm:$0xff]  }
 0x1b6   :  { %1088 = vmatprep.subr.bf16.mxu1 %v2807_v61 }
 0x1b8   :  { %v494_v1 = vld [vmem:[#allocation3 + $0x27] sm:$0xff] }
 0x1b9   :  { %v489_v2 = vld [vmem:[#allocation3 + $0x26] sm:$0xff]  ;;  %1089 = vmatpush1.bf16.msra.mxu1 %v2805_v62  ;;  %v521_v4 = vpack.c.bf16 %v494_v1, %v494_v1  ;;  %v2864_v1 = vld [vmem:[#allocation8 + $0x48] sm:$0xff]  }
 0x1ba   :  { %v520_v6 = vpack.c.bf16 %v489_v2, %v489_v2  ;;  %1090 = vmatprep.subr.bf16.mxu1 %v2810_v63  ;;  %v503_v35 = vld [vmem:[#allocation3 + $0x21] sm:$0xff]  ;;  %v504_v45 = vld [vmem:[#allocation3 + $0x29] sm:$0xff] }
 0x1bb   :  { %1069 = vmatprep.mubr.bf16.mxu1 %v521_v4  ;;  %v518_v42 = vpack.c.bf16 %v503_v35, %v502_v39  ;;  %v523_v48 = vpack.c.bf16 %v504_v45, %v504_v45  ;;  %v508_v57 = vld [vmem:[#allocation3 + $0x22] sm:$0xff]  ;;  %v509_v0 = vld [vmem:[#allocation3 + $0x2a] sm:$0xff]  ;;  %v2867_v4 = vld [vmem:[#allocation8 + $0x10] sm:$0xff]  }
 0x1bc   :  { %1070 = vmatmul.mubr.bf16.gmra.mrb[8].mxu1 %v520_v6  ;;  %v524_v61 = vpack.c.bf16 %v509_v0, %v509_v0  ;;  %v2862_v62 = vld [vmem:[#allocation8 + $0x40] sm:$0xff]   ;;  %v2865_v2 = vld [vmem:[#allocation8 + $0x8] sm:$0xff]   ;;  %v2869_v6 = vld [vmem:[#allocation8 + $0x18] sm:$0xff]  }
 0x1bd   :  { %1091 = vmatpush1.bf16.msra.mxu1 %v2808_v5  ;;  %1110 = vmatprep.mubr.bf16.mxu1 %v513_v9  ;;  %v2863_v63 = vld [vmem:[#allocation8] sm:$0xff]   ;;  %v2868_v5 = vld [vmem:[#allocation8 + $0x58] sm:$0xff]   ;;  %v2873_v9 = vld [vmem:[#allocation8 + $0x28] sm:$0xff]  }
 0x1be   :  { %1092 = vmatprep.subr.bf16.mxu1 %v2813_v8  ;;  %2405 = vmatprep.subr.bf16.mxu0 %v2862_v62  ;;  %v2872_v8 = vld [vmem:[#allocation8 + $0x68] sm:$0xff]   ;;  %v1244_v39 = vld [vmem:[#allocation4] sm:$0x80] }
 0x1bf   :  { %2406 = vmatpush3.bf16.msra.mxu0 %v2863_v63 }
 0x1c0   :  { %2407 = vmatprep.subr.bf16.mxu0 %v2864_v1 }
 0x1c1   :  { %1093 = vmatpush1.bf16.msra.mxu1 %v2811_v10  ;;  %v2874_v10 = vld [vmem:[#allocation8 + $0x70] sm:$0xff]  }
 0x1c2   :  { %1094 = vmatprep.subr.bf16.mxu1 %v2816_v11  ;;  %v2875_v11 = vld [vmem:[#allocation8 + $0x30] sm:$0xff]  }
 0x1c3   :  { %2408 = vmatpush3.bf16.msra.mxu0 %v2865_v2 }
 0x1c4   :  { %2409 = vmatprep.subr.bf16.mxu0 %v2866_v3 }
 0x1c5   :  { %1095 = vmatpush1.bf16.msra.mxu1 %v2814_v12  ;;  %v2876_v12 = vld [vmem:[#allocation8 + $0x78] sm:$0xff]  }
 0x1c6   :  { %1096 = vmatprep.subr.bf16.mxu1 %v2819_v15  ;;  %v2877_v15 = vld [vmem:[#allocation8 + $0x38] sm:$0xff]  }
 0x1c7   :  { %2410 = vmatpush3.bf16.msra.mxu0 %v2867_v4 }
 0x1c8   :  { %2411 = vmatprep.subr.bf16.mxu0 %v2868_v5 }
 0x1c9   :  { %1097 = vmatpush1.bf16.msra.mxu1 %v2817_v20  ;;  %v2878_v20 = vld [vmem:[#allocation8 + $0xc0] sm:$0xff]  }
 0x1ca   :  { %1098 = vmatprep.subr.bf16.mxu1 %v2822_v21  ;;  %v607_v21 = vlaneseq }
 0x1cb   :  { %2412 = vmatpush3.bf16.msra.mxu0 %v2869_v6 }
 0x1cd   :  { %1099 = vmatpush1.bf16.msra.mxu1 %v2820_v22  ;;  %v608_v22 = vshrl.u32 %v607_v21, 7 }
 0x1ce   :  { %1100 = vmatprep.subr.bf16.mxu1 %v2825_v23 }
 0x1cf   :  { %v609_v23 = vsub.s32 0, %v608_v22 }
 0x1d1   :  { %1101 = vmatpush1.bf16.msra.mxu1 %v2823_v24  ;;  %v605_v24 = vld [vmem:[%s3503_s5] sm:$0x3] }
 0x1d2   :  { %1102 = vmatprep.subr.bf16.mxu1 %v2828_v25  ;;  %v613_v25 = vsub.s32 1, %v608_v22 }
 0x1d5   :  { %1103 = vmatpush1.bf16.msra.mxu1 %v2826_v26  ;;  %v3283_v26 = vrot.slane %v605_v24, %v609_v23 }
 0x1d6   :  { %1104 = vmatprep.subr.bf16.mxu1 %v2831_v27  ;;  %v3285_v27 = vrot.slane %v605_v24, %v613_v25 }
 0x1d9   :  { %1105 = vmatpush1.bf16.msra.mxu1 %v2829_v28 }
 0x1da   :  { %1106 = vmatprep.subr.bf16.mxu1 %v2834_v29 }
 0x1dd   :  { %1107 = vmatpush1.bf16.msra.mxu1 %v2832_v30 }
 0x1de   :  { %1108 = vmatprep.subr.bf16.mxu1 %v2837_v31 }
 0x1e1   :  { %1109 = vmatpush1.bf16.msra.mxu1 %v2835_v32 }
 0x1e2   :  { %1139 = vmatprep.subr.bf16.mxu1 %v2840_v33 }
 0x1e4   :  { %1111 = vmatmul.mubr.bf16.vlgmr.msra.gmra.mrb[0].mxu1 %v512_v18  ;;  %v522_v18 = vpack.c.bf16 %v3266_v60, %v3266_v60  ;;  %v519_v60 = vpack.c.bf16 %v508_v57, %v507_v58 }
 0x1e5   :  { %1120 = vmatprep.mubr.bf16.mxu1 %v518_v42  ;;  %1140 = vmatpush1.bf16.msra.mxu1 %v2838_v36 }
 0x1e6   :  { %1141 = vmatprep.subr.bf16.mxu1 %v2843_v40 }
 0x1e9   :  { %1142 = vmatpush1.bf16.msra.mxu1 %v2841_v43  ;;  %v3291_v43 = vld [vmem:[#allocation4 + $0x68] sm:$0x1] }
 0x1ea   :  { %1143 = vmatprep.subr.bf16.mxu1 %v2846_v44  ;;  %v3293_v44 = vld [vmem:[#allocation4 + $0x60] sm:$0x1] }
 0x1ec   :  { %1121 = vmatmul.mubr.bf16.gmra.mrb[4].mxu1 %v517_v41  ;;  %v2861_v41 = vld [vmem:[#allocation5 + $0x274] ss:$8 sps:$4 sm:$0xff]  }
 0x1ed   :  { %1130 = vmatprep.mubr.bf16.mxu1 %v523_v48  ;;  %1144 = vmatpush1.bf16.msra.mxu1 %v2844_v46 }
 0x1ee   :  { %1145 = vmatprep.subr.bf16.mxu1 %v2849_v47  ;;  %v1245_v47 = vld [vmem:[#allocation4 + $0x8] sm:$0x80] }
 0x1f1   :  { %1146 = vmatpush1.bf16.msra.mxu1 %v2847_v49 }
 0x1f2   :  { %1147 = vmatprep.subr.bf16.mxu1 %v2852_v14 }
 0x1f4   :  { %1131 = vmatmul.mubr.bf16.gmra.mrb[8].mxu1 %v522_v18  ;;  %v1344_v18 = vrot.slane %v3291_v43, 2  ;;  %v2892_v43 = vld [vmem:[#allocation8 + $0xf8] sm:$0xff]  }
 0x1f5   :  { %1148 = vmatpush1.bf16.msra.mxu1 %v2850_v17  ;;  %1171 = vmatprep.mubr.bf16.mxu1 %v3001_v59 }
 0x1f6   :  { %1149 = vmatprep.subr.bf16.mxu1 %v2855_v50  ;;  %v1342_v50 = vrot.slane %v3293_v44, 2 }
 0x1f9   :  { %1150 = vmatpush1.bf16.msra.mxu1 %v2853_v51 }
 0x1fa   :  { %1151 = vmatprep.subr.bf16.mxu1 %v2858_v34 }
 0x1fd   :  { %1152 = vmatpush1.bf16.msra.mxu1 %v2856_v38 }
 0x1fe   :  { %1153 = vmatprep.subr.bf16.mxu1 %v2861_v41 }
 0x201   :  { %1154 = vmatpush1.bf16.msra.mxu1 %v2859_v52 }
 0x204   :  { %1172 = vmatmul.mubr.bf16.vlgmr.msra.gmra.mrb[0].mxu1 %v514_v56 }
 0x205   :  { %1181 = vmatprep.mubr.bf16.mxu1 %v3001_v59 }
 0x20c   :  { %1182 = vmatmul.mubr.bf16.gmra.mrb[4].mxu1 %v519_v60 }
 0x20d   :  { %1191 = vmatprep.mubr.bf16.mxu1 %v3001_v59  ;;  %v2870_v59 = vld [vmem:[#allocation8 + $0x60] sm:$0xff]  }
 0x20e   :  { %2413 = vmatprep.subr.bf16.mxu0 %v2870_v59 }
 0x20f   :  { %2414 = vmatpush3.bf16.msra.mxu0 %v2871_v7 }
 0x210   :  { %2415 = vmatprep.subr.bf16.mxu0 %v2872_v8 }
 0x213   :  { %2416 = vmatpush3.bf16.msra.mxu0 %v2873_v9 }
 0x214   :  { %1192 = vmatmul.mubr.bf16.gmra.mrb[8].mxu1 %v524_v61  ;;  %2417 = vmatprep.subr.bf16.mxu0 %v2874_v10 }
 0x217   :  { %2418 = vmatpush3.bf16.msra.mxu0 %v2875_v11 }
 0x218   :  { %2419 = vmatprep.subr.bf16.mxu0 %v2876_v12 }
 0x21b   :  { %2420 = vmatpush3.bf16.msra.mxu0 %v2877_v15 }
 0x21c   :  { %2439 = vmatprep.subr.bf16.mxu0 %v2878_v20 }
 0x2d7   :  { %v1173_v28 = vpop.f32.mrb[0].mxu1 }
 0x2d8   :  { %v2611_v29 = vadd.f32 %v1173_v28, %v3283_v26  ;;  %v1175_v30 = vpop.f32.mrb[1].mxu1 }
 0x2d9   :  { %v2612_v31 = vadd.f32 %v1175_v30, %v3285_v27  ;;  %v1177_v32 = vpop.f32.mrb[2].mxu1 }
 0x2da   :  { %v1200_v33 = vmax.f32 %v2611_v29, 0.0  ;;  %v2613_v35 = vadd.f32 %v1177_v32, %v3283_v26  ;;  %v1179_v36 = vpop.f32.mrb[3].mxu1 }
 0x2db   :  { %v1201_v40 = vmax.f32 %v2612_v31, 0.0  ;;  %v2614_v42 = vadd.f32 %v1179_v36, %v3285_v27 }
 0x2dc   :  { %v3296_v45 = vmul.f32 %v1200_v33, %v3235_v13  ;;  %v1202_v46 = vmax.f32 %v2613_v35, 0.0 }
 0x2dd   :  { %v1211_v48 = vmul.f32 %v1201_v40, %v3235_v13  ;;  %v1203_v49 = vmax.f32 %v2614_v42, 0.0 }
 0x2de   :  { %1234 = vst [vmem:[#allocation4 + $0x10] sm:$0xff] %v3296_v45  ;;  %v3301_v14 = vmul.f32 %v1202_v46, %v3240_v16  ;;  %v1358_v17 = vpack.c.bf16 %v3296_v45, %v1244_v39  ;;  %v1281_v41 = vrot.slane %v3296_v45, 1 }
 0x2df   :  { %1235 = vst [vmem:[#allocation4 + $0x18] sm:$0xff] %v1211_v48  ;;  %v3307_v51 = vmul.f32 %v1203_v49, %v3240_v16  ;;  %v1183_v34 = vpop.f32.mrb[4].mxu1  ;;  %v1359_v38 = vpack.c.bf16 %v1211_v48, %v1245_v47  ;;  %v1282_v13 = vrot.slane %v1211_v48, 1 }
 0x2e0   :  { %v2615_v52 = vadd.f32 %v1183_v34, %v3283_v26  ;;  %v1185_v53 = vpop.f32.mrb[5].mxu1  ;;  %v1283_v54 = vrot.slane %v3301_v14, 1  ;;  %v1481_v56 = vshrl.u32 %v1358_v17, 16  ;;  %v1484_v57 = vshll.u32 %v1358_v17, 16 }
 0x2e1   :  { %v2616_v58 = vadd.f32 %v1185_v53, %v3285_v27  ;;  %v1187_v60 = vpop.f32.mrb[6].mxu1  ;;  %v1285_v0 = vrot.slane %v3307_v51, 1  ;;  %v1498_v61 = vshrl.u32 %v1359_v38, 16  ;;  %v1501_v16 = vshll.u32 %v1359_v38, 16 }
 0x2e2   :  { %v1204_v62 = vmax.f32 %v2615_v52, 0.0  ;;  %v2617_v63 = vadd.f32 %v1187_v60, %v3283_v26  ;;  %v1189_v1 = vpop.f32.mrb[7].mxu1  ;;  %v1483_v2 = vrot.slane %v1481_v56, 3  ;;  %v1486_v3 = vrot.slane %v1484_v57, 4 }
 0x2e3   :  { %v1205_v4 = vmax.f32 %v2616_v58, 0.0  ;;  %v2618_v5 = vadd.f32 %v1189_v1, %v3285_v27  ;;  %v1500_v6 = vrot.slane %v1498_v61, 3  ;;  %v1503_v59 = vrot.slane %v1501_v16, 4 }
 0x2e4   :  { %v3317_v7 = vmul.f32 %v1204_v62, %v3249_v19  ;;  %v1206_v8 = vmax.f32 %v2617_v63, 0.0  ;;  %v1487_v9 = vor.u32 %v1486_v3, %v1483_v2  ;;  %v1286_v10 = vsel %vm1280_vm8, %v1282_v13, %v1285_v0  ;;  %v2879_v62 = vld [vmem:[#allocation8 + $0x80] sm:$0xff]   ;;  %v2880_v3 = vld [vmem:[#allocation8 + $0xc8] sm:$0xff]  }
 0x2e5   :  { %v3321_v11 = vmul.f32 %v1205_v4, %v3249_v19  ;;  %v1207_v12 = vmax.f32 %v2618_v5, 0.0  ;;  %v1504_v15 = vor.u32 %v1503_v59, %v1500_v6  ;;  %v1361_v20 = vpack.c.bf16 %v1286_v10, %v1282_v13 }
 0x2e6   :  { %v3324_v21 = vmul.f32 %v1206_v8, %v3254_v37  ;;  %v1287_v22 = vrot.slane %v3317_v7, 1  ;;  %v1364_v23 = vpack.c.bf16 %v3317_v7, %v3301_v14  ;;  %v1284_v24 = vsel %vm1280_vm8, %v1281_v41, %v1283_v54 }
 0x2e7   :  { %v3335_v19 = vmul.f32 %v1207_v12, %v3254_v37  ;;  %v1193_v25 = vpop.f32.mrb[8].mxu1  ;;  %v1289_v28 = vrot.slane %v3321_v11, 1  ;;  %v1365_v29 = vpack.c.bf16 %v3321_v11, %v3307_v51  ;;  %v1532_v30 = vshrl.u32 %v1361_v20, 16 }
 0x2e8   :  { %v2619_v31 = vadd.f32 %v1193_v25, %v3283_v26  ;;  %v1195_v32 = vpop.f32.mrb[9].mxu1  ;;  %v1489_v33 = vshrl.u32 %v1364_v23, 16  ;;  %v1492_v35 = vshll.u32 %v1364_v23, 16  ;;  %v1291_v36 = vrot.slane %v3324_v21, 1  ;;  %v1259_v23 = vld [vmem:[#allocation4 + $0x18] sm:$0xfe] }
 0x2e9   :  { %v2620_v39 = vadd.f32 %v1195_v32, %v3285_v27  ;;  %v1197_v40 = vpop.f32.mrb[10].mxu1  ;;  %v1506_v42 = vshrl.u32 %v1365_v29, 16  ;;  %v1509_v37 = vshll.u32 %v1365_v29, 16  ;;  %v1293_v46 = vrot.slane %v3335_v19, 1 }
 0x2ea   :  { %v1208_v47 = vmax.f32 %v2619_v31, 0.0  ;;  %v1198_v48 = vpop.f32.mrb[11].mxu1  ;;  %v1491_v49 = vrot.slane %v1489_v33, 3  ;;  %v1494_v17 = vrot.slane %v1492_v35, 4  ;;  %v1290_v34 = vsel %vm1280_vm8, %v1285_v0, %v1289_v28 }
 0x2eb   :  { %v1209_v38 = vmax.f32 %v2620_v39, 0.0  ;;  %v1508_v26 = vrot.slane %v1506_v42, 3  ;;  %v1511_v13 = vrot.slane %v1509_v37, 4  ;;  %v1294_v52 = vsel %vm1280_vm8, %v1289_v28, %v1293_v46 }
 0x2ec   :  { %v3347_v53 = vmul.f32 %v1208_v47, %v3263_v55  ;;  %v3349_v27 = vor.u32 %v1494_v17, %v1491_v49  ;;  %v1367_v56 = vpack.c.bf16 %v1294_v52, %v1290_v34  ;;  %v1534_v57 = vrot.slane %v1532_v30, 3  ;;  %v2883_v17 = vld [vmem:[#allocation8 + $0x90] sm:$0xff]   ;;  %v2884_v52 = vld [vmem:[#allocation8 + $0xd8] sm:$0xff]  }
 0x2ed   :  { %v3352_v58 = vmul.f32 %v1209_v38, %v3263_v55  ;;  %v3354_v60 = vor.u32 %v1511_v13, %v1508_v26  ;;  %v1535_v61 = vshll.u32 %v1361_v20, 16  ;;  %v1288_v0 = vsel %vm1280_vm8, %v1283_v54, %v1287_v22 }
 0x2ee   :  { %1242 = vst [vmem:[#allocation4 + $0x50] sm:$0xff] %v3347_v53  ;;  %v1496_v16 = vsel %vm1479_vm9, %v1487_v9, %v3349_v27  ;;  %v1540_v63 = vshrl.u32 %v1367_v56, 16  ;;  %v1543_v1 = vshll.u32 %v1367_v56, 16  ;;  %v1292_v2 = vsel %vm1280_vm8, %v1287_v22, %v1291_v36 }
 0x2ef   :  { %1243 = vst [vmem:[#allocation4 + $0x58] sm:$0xff] %v3352_v58  ;;  %v1513_v55 = vsel %vm1479_vm9, %v1504_v15, %v3354_v60  ;;  %v1537_v4 = vrot.slane %v1535_v61, 4  ;;  %v1360_v54 = vpack.c.bf16 %v1284_v24, %v1281_v41  ;;  %v1366_v5 = vpack.c.bf16 %v1292_v2, %v1288_v0  ;;  %v2881_v15 = vld [vmem:[#allocation8 + $0x88] sm:$0xff]   ;;  %v2882_v24 = vld [vmem:[#allocation8 + $0xd0] sm:$0xff]   ;;  %v2885_v2 = vld [vmem:[#allocation8 + $0x98] sm:$0xff]  }
 0x2f0   :  { %1974 = vmatprep.mubr.bf16.mxu0 %v1513_v55  ;;  %v1542_v6 = vrot.slane %v1540_v63, 3  ;;  %v1545_v59 = vrot.slane %v1543_v1, 4  ;;  %v1297_v8 = vrot.slane %v3352_v58, 1  ;;  %v1295_v9 = vrot.slane %v3347_v53, 1 }
 0x2f1   :  { %1975 = vmatmul.mubr.bf16.vlgmr.msra.gmra.mrb[12].mxu0 %v1496_v16  ;;  %v1538_v10 = vor.u32 %v1537_v4, %v1534_v57  ;;  %v1515_v12 = vshrl.u32 %v1360_v54, 16  ;;  %v1518_v20 = vshll.u32 %v1360_v54, 16  ;;  %v1523_v22 = vshrl.u32 %v1366_v5, 16 }
 0x2f2   :  { %2440 = vmatpush3.bf16.msra.mxu0 %v2879_v62  ;;  %v1546_v25 = vor.u32 %v1545_v59, %v1542_v6  ;;  %v1526_v28 = vshll.u32 %v1366_v5, 16  ;;  %v1298_v45 = vsel %vm1280_vm8, %v1293_v46, %v1297_v8  ;;  %v1296_v41 = vsel %vm1280_vm8, %v1291_v36, %v1295_v9  ;;  %v1258_v59 = vld [vmem:[#allocation4 + $0x10] sm:$0xfe] }
 0x2f3   :  { %2441 = vmatprep.subr.bf16.mxu0 %v2880_v3  ;;  %v1517_v29 = vrot.slane %v1515_v12, 3  ;;  %v1520_v30 = vrot.slane %v1518_v20, 4  ;;  %v1525_v31 = vrot.slane %v1523_v22, 3  ;;  %v1373_v32 = vpack.c.bf16 %v1297_v8, %v1298_v45 }
 0x2f4   :  { %v3373_v33 = vsel %vm1479_vm9, %v1538_v10, %v1546_v25  ;;  %v1528_v35 = vrot.slane %v1526_v28, 4  ;;  %v1372_v39 = vpack.c.bf16 %v1295_v9, %v1296_v41  ;;  %v1325_v40 = vrot.slane %v1259_v23, 2  ;;  %v2886_v10 = vld [vmem:[#allocation8 + $0xe0] sm:$0xff]  }
 0x2f5   :  { %v1254_v42 = vld [vmem:[#allocation4 + $0x50] sm:$0x7f]  ;;  %v1521_v37 = vor.u32 %v1520_v30, %v1517_v29  ;;  %v1610_v47 = vshrl.u32 %v1373_v32, 16  ;;  %v1613_v48 = vshll.u32 %v1373_v32, 16  ;;  %v1328_v46 = vrot.slane %v3307_v51, 2 }
 0x2f6   :  { %2442 = vmatpush3.bf16.msra.mxu0 %v2881_v15  ;;  %v1255_v36 = vld [vmem:[#allocation4 + $0x58] sm:$0x7f]  ;;  %v1370_v49 = vpack.c.bf16 %v1254_v42, %v3324_v21  ;;  %v1529_v34 = vor.u32 %v1528_v35, %v1525_v31  ;;  %v1601_v38 = vshrl.u32 %v1372_v39, 16  ;;  %v1604_v26 = vshll.u32 %v1372_v39, 16 }
 0x2f7   :  { %v1371_v13 = vpack.c.bf16 %v1255_v36, %v3335_v19  ;;  %2443 = vmatprep.subr.bf16.mxu0 %v2882_v24  ;;  %v1612_v56 = vrot.slane %v1610_v47, 3  ;;  %v1615_v57 = vrot.slane %v1613_v48, 4  ;;  %v1329_v61 = vsel %vm1323_vm10, %v1325_v40, %v1328_v46  ;;  %v2888_v35 = vld [vmem:[#allocation8 + $0xe8] sm:$0xff]  }
 0x2f8   :  { %v1583_v0 = vshrl.u32 %v1370_v49, 16  ;;  %v1586_v16 = vshll.u32 %v1370_v49, 16  ;;  %v3380_v51 = vsel %vm1479_vm9, %v1521_v37, %v1529_v34  ;;  %v1603_v62 = vrot.slane %v1601_v38, 3 }
 0x2f9   :  { %v1592_v63 = vshrl.u32 %v1371_v13, 16  ;;  %v1595_v1 = vshll.u32 %v1371_v13, 16  ;;  %v3382_v55 = vor.u32 %v1615_v57, %v1612_v56  ;;  %v1606_v3 = vrot.slane %v1604_v26, 4  ;;  %v2890_v26 = vld [vmem:[#allocation8 + $0xf0] sm:$0xff]  }
 0x2fa   :  { %v1585_v4 = vrot.slane %v1583_v0, 3  ;;  %v1588_v54 = vrot.slane %v1586_v16, 4  ;;  %2444 = vmatpush3.bf16.msra.mxu0 %v2883_v17  ;;  %v1332_v5 = vrot.slane %v3321_v11, 2  ;;  %v1336_v6 = vrot.slane %v3335_v19, 2 }
 0x2fb   :  { %v1594_v8 = vrot.slane %v1592_v63, 3  ;;  %v1597_v9 = vrot.slane %v1595_v1, 4  ;;  %2445 = vmatprep.subr.bf16.mxu0 %v2884_v52  ;;  %v3388_v12 = vsel %vm1479_vm9, %v1546_v25, %v3382_v55  ;;  %v3390_v20 = vor.u32 %v1606_v3, %v1603_v62  ;;  %v2887_v25 = vld [vmem:[#allocation8 + $0xa0] sm:$0xff]   ;;  %v2891_v1 = vld [vmem:[#allocation8 + $0xb0] sm:$0xff]  }
 0x2fc   :  { %v1589_v22 = vor.u32 %v1588_v54, %v1585_v4  ;;  %v1333_v23 = vsel %vm1323_vm10, %v1328_v46, %v1332_v5  ;;  %v1337_v15 = vsel %vm1323_vm10, %v1332_v5, %v1336_v6  ;;  %v1363_v28 = vpack.c.bf16 %v1329_v61, %v1325_v40 }
 0x2fd   :  { %v1598_v11 = vor.u32 %v1597_v9, %v1594_v8  ;;  %v3396_v19 = vsel %vm1479_vm9, %v1529_v34, %v3390_v20  ;;  %v1369_v45 = vpack.c.bf16 %v1337_v15, %v1333_v23  ;;  %v1324_v41 = vrot.slane %v1258_v59, 2  ;;  %v2893_v8 = vld [vmem:[#allocation8 + $0xb8] sm:$0xff]  }
 0x2fe   :  { %v1590_v24 = vsel %vm1479_vm9, %v3349_v27, %v1589_v22  ;;  %2446 = vmatpush3.bf16.msra.mxu0 %v2885_v2  ;;  %v1566_v29 = vshrl.u32 %v1363_v28, 16  ;;  %v1569_v30 = vshll.u32 %v1363_v28, 16  ;;  %v1326_v31 = vrot.slane %v3301_v14, 2  ;;  %v2894_v28 = vld [vmem:[#allocation8 + $0x140] sm:$0xff]  }
 0x2ff   :  { %v1599_v32 = vsel %vm1479_vm9, %v3354_v60, %v1598_v11  ;;  %2447 = vmatprep.subr.bf16.mxu0 %v2886_v10  ;;  %v1574_v39 = vshrl.u32 %v1369_v45, 16  ;;  %v1577_v40 = vshll.u32 %v1369_v45, 16  ;;  %v1330_v42 = vrot.slane %v3317_v7, 2  ;;  %v2889_v60 = vld [vmem:[#allocation8 + $0xa8] sm:$0xff]  }
 0x300   :  { %1982 = vmatprep.mubr.bf16.mxu0 %v1599_v32  ;;  %v1568_v37 = vrot.slane %v1566_v29, 3  ;;  %v1571_v47 = vrot.slane %v1569_v30, 4  ;;  %v1327_v27 = vsel %vm1323_vm10, %v1324_v41, %v1326_v31  ;;  %v1334_v48 = vrot.slane %v3324_v21, 2  ;;  %v2896_v29 = vld [vmem:[#allocation8 + $0x148] sm:$0xff]   ;;  %v2899_v32 = vld [vmem:[#allocation8 + $0x110] sm:$0xff]  }
 0x301   :  { %1983 = vmatmul.mubr.bf16.gmra.mrb[16].mxu0 %v1590_v24  ;;  %v1576_v46 = vrot.slane %v1574_v39, 3  ;;  %v1579_v36 = vrot.slane %v1577_v40, 4  ;;  %v1331_v14 = vsel %vm1323_vm10, %v1326_v31, %v1330_v42  ;;  %v1362_v49 = vpack.c.bf16 %v1327_v27, %v1324_v41  ;;  %v2897_v30 = vld [vmem:[#allocation8 + $0x108] sm:$0xff]   ;;  %v2898_v31 = vld [vmem:[#allocation8 + $0x150] sm:$0xff]   ;;  %v2901_v39 = vld [vmem:[#allocation8 + $0x118] sm:$0xff]  }
 0x302   :  { %1989 = vmatprep.mubr.bf16.mxu0 %v1598_v11  ;;  %2448 = vmatpush3.bf16.msra.mxu0 %v2887_v25  ;;  %v1572_v17 = vor.u32 %v1571_v47, %v1568_v37  ;;  %v1335_v34 = vsel %vm1323_vm10, %v1330_v42, %v1334_v48  ;;  %v1340_v7 = vrot.slane %v3352_v58, 2  ;;  %v1338_v38 = vrot.slane %v3347_v53, 2  ;;  %v2895_v25 = vld [vmem:[#allocation8 + $0x100] sm:$0xff]   ;;  %v2905_v42 = vld [vmem:[#allocation8 + $0x128] sm:$0xff]   ;;  %v2906_v37 = vld [vmem:[#allocation8 + $0x170] sm:$0xff]  }
 0x303   :  { %2449 = vmatprep.subr.bf16.mxu0 %v2888_v35  ;;  %v1580_v13 = vor.u32 %v1579_v36, %v1576_v46  ;;  %v1368_v21 = vpack.c.bf16 %v1335_v34, %v1331_v14  ;;  %v1549_v52 = vshrl.u32 %v1362_v49, 16  ;;  %v1552_v56 = vshll.u32 %v1362_v49, 16  ;;  %v2900_v35 = vld [vmem:[#allocation8 + $0x158] sm:$0xff]   ;;  %v2902_v40 = vld [vmem:[#allocation8 + $0x160] sm:$0xff]   ;;  %v2907_v47 = vld [vmem:[#allocation8 + $0x130] sm:$0xff]  }
 0x304   :  { %v1341_v57 = vsel %vm1323_vm10, %v1336_v6, %v1340_v7  ;;  %v1345_v61 = vsel %vm1323_vm10, %v1340_v7, %v1344_v18  ;;  %v1339_v0 = vsel %vm1323_vm10, %v1334_v48, %v1338_v38  ;;  %v1343_v58 = vsel %vm1323_vm10, %v1338_v38, %v1342_v50  ;;  %v2914_v27 = vld [vmem:[#allocation3] sm:$0xff]  ;;  %v2131_v48 = vld [vmem:[%s3506_s8 + $0x8] sm:$0xff]  ;;  %v2132_v46 = vld [vmem:[%s3506_s8 + $0x10] sm:$0xff] }
 0x305   :  { %v1581_v53 = vsel %vm1479_vm9, %v1572_v17, %v1580_v13  ;;  %v1551_v16 = vrot.slane %v1549_v52, 3  ;;  %v1554_v62 = vrot.slane %v1552_v56, 4  ;;  %v1557_v63 = vshrl.u32 %v1368_v21, 16  ;;  %v2133_v49 = vld [vmem:[%s3506_s8 + $0x18] sm:$0xff]  ;;  %v2134_v17 = vld [vmem:[%s3506_s8 + $0x20] sm:$0xff]  ;;  %v2135_v34 = vld [vmem:[%s3506_s8 + $0x28] sm:$0xff] }
 0x306   :  { %2450 = vmatpush3.bf16.msra.mxu0 %v2889_v60  ;;  %v1560_v2 = vshll.u32 %v1368_v21, 16  ;;  %v1375_v3 = vpack.c.bf16 %v1345_v61, %v1341_v57  ;;  %v1374_v4 = vpack.c.bf16 %v1343_v58, %v1339_v0  ;;  %v3002_v36 = vmov 0.0|0.0   ;;  %v2136_v7 = vld [vmem:[%s3506_s8 + $0x30] sm:$0xff]  ;;  %v2138_v21 = vld [vmem:[%s3506_s8 + $0x40] sm:$0xff]  ;;  %v2139_v52 = vld [vmem:[%s3506_s8 + $0x48] sm:$0xff] }
 0x307   :  { %2451 = vmatprep.subr.bf16.mxu0 %v2890_v26  ;;  %v1559_v54 = vrot.slane %v1557_v63, 3  ;;  %v1555_v44 = vor.u32 %v1554_v62, %v1551_v16  ;;  %v2591_v60 = vpack.c.bf16 %v2133_v49, %v2132_v46  ;;  %v2594_v38 = vpack.c.bf16 %v2135_v34, %v2134_v17  ;;  %v2137_v26 = vld [vmem:[%s3506_s8 + $0x38] sm:$0xff]  ;;  %v2140_v57 = vld [vmem:[%s3506_s8 + $0x50] sm:$0xff]  ;;  %v2142_v58 = vld [vmem:[%s3506_s8 + $0x60] sm:$0xff] }
 0x308   :  { %v1562_v18 = vrot.slane %v1560_v2, 4  ;;  %v1628_v5 = vshrl.u32 %v1375_v3, 16  ;;  %v1631_v6 = vshll.u32 %v1375_v3, 16  ;;  %v1619_v59 = vshrl.u32 %v1374_v4, 16  ;;  %v2141_v61 = vld [vmem:[%s3506_s8 + $0x58] sm:$0xff]  ;;  %v2144_v62 = vld [vmem:[%s3506_s8 + $0x70] sm:$0xff] }
 0x309   :  { %1990 = vmatmul.mubr.bf16.gmra.mrb[20].mxu0 %v1589_v22  ;;  %v1622_v50 = vshll.u32 %v1374_v4, 16  ;;  %v2600_v56 = vpack.c.bf16 %v2139_v52, %v2138_v21  ;;  %v2603_v0 = vpack.c.bf16 %v2141_v61, %v2140_v57  ;;  %v2145_v63 = vld [vmem:[%s3506_s8 + $0x78] sm:$0xff] }
 0x30a   :  { %2029 = vmatprep.mubr.bf16.mxu0 %v3373_v33  ;;  %2452 = vmatpush3.bf16.msra.mxu0 %v2891_v1  ;;  %v1563_v9 = vor.u32 %v1562_v18, %v1559_v54  ;;  %v1630_v10 = vrot.slane %v1628_v5, 3  ;;  %v1633_v23 = vrot.slane %v1631_v6, 4  ;;  %v1621_v15 = vrot.slane %v1619_v59, 3 }
 0x30b   :  { %2453 = vmatprep.subr.bf16.mxu0 %v2892_v43  ;;  %v1624_v11 = vrot.slane %v1622_v50, 4  ;;  %v2609_v1 = vpack.c.bf16 %v2145_v63, %v2144_v62 }
 0x30c   :  { %v1564_v45 = vsel %vm1479_vm9, %v1555_v44, %v1563_v9  ;;  %v1634_v41 = vor.u32 %v1633_v23, %v1630_v10 }
 0x30d   :  { %v1625_v24 = vor.u32 %v1624_v11, %v1621_v15 }
 0x30e   :  { %2454 = vmatpush3.bf16.msra.mxu0 %v2893_v8  ;;  %v1635_v22 = vsel %vm1479_vm9, %v1580_v13, %v1634_v41  ;;  %v2597_v13 = vpack.c.bf16 %v2137_v26, %v2136_v7 }
 0x30f   :  { %2473 = vmatprep.subr.bf16.mxu0 %v2894_v28  ;;  %v1626_v33 = vsel %vm1479_vm9, %v1563_v9, %v1625_v24  ;;  %v2344_v28 = vld [vmem:[%s3505_s7] ss:$0 sm:$0xff] }
 0x311   :  { %2030 = vmatmul.mubr.bf16.vlgmr.msra.gmra.mrb[24].mxu0 %v3380_v51  ;;  %v2903_v51 = vld [vmem:[#allocation8 + $0x120] sm:$0xff]  }
 0x312   :  { %2037 = vmatprep.mubr.bf16.mxu0 %v3388_v12  ;;  %2474 = vmatpush3.bf16.msra.mxu0 %v2895_v25  ;;  %v2904_v12 = vld [vmem:[#allocation8 + $0x168] sm:$0xff]  }
 0x313   :  { %2475 = vmatprep.subr.bf16.mxu0 %v2896_v29 }
 0x316   :  { %2476 = vmatpush3.bf16.msra.mxu0 %v2897_v30 }
 0x317   :  { %2477 = vmatprep.subr.bf16.mxu0 %v2898_v31 }
 0x319   :  { %2038 = vmatmul.mubr.bf16.gmra.mrb[28].mxu0 %v3396_v19  ;;  %v2908_v19 = vld [vmem:[#allocation8 + $0x178] sm:$0xff]  }
 0x31a   :  { %2044 = vmatprep.mubr.bf16.mxu0 %v3382_v55  ;;  %2478 = vmatpush3.bf16.msra.mxu0 %v2899_v32  ;;  %v2909_v55 = vld [vmem:[#allocation8 + $0x138] sm:$0xff]  }
 0x31b   :  { %2479 = vmatprep.subr.bf16.mxu0 %v2900_v35 }
 0x31e   :  { %2480 = vmatpush3.bf16.msra.mxu0 %v2901_v39 }
 0x31f   :  { %2481 = vmatprep.subr.bf16.mxu0 %v2902_v40 }
 0x321   :  { %2045 = vmatmul.mubr.bf16.gmra.mrb[32].mxu0 %v3390_v20  ;;  %v2130_v20 = vld [vmem:[%s3506_s8] sm:$0xff] }
 0x322   :  { %2482 = vmatpush3.bf16.msra.mxu0 %v2903_v51  ;;  %2084 = vmatprep.mubr.bf16.mxu0 %v1581_v53  ;;  %v2588_v14 = vpack.c.bf16 %v2131_v48, %v2130_v20  ;;  %v2143_v53 = vld [vmem:[%s3506_s8 + $0x68] sm:$0xff] }
 0x323   :  { %2483 = vmatprep.subr.bf16.mxu0 %v2904_v12  ;;  %v2606_v16 = vpack.c.bf16 %v2143_v53, %v2142_v58 }
 0x326   :  { %2484 = vmatpush3.bf16.msra.mxu0 %v2905_v42 }
 0x327   :  { %2485 = vmatprep.subr.bf16.mxu0 %v2906_v37 }
 0x32a   :  { %2486 = vmatpush3.bf16.msra.mxu0 %v2907_v47 }
 0x32b   :  { %2487 = vmatprep.subr.bf16.mxu0 %v2908_v19 }
 0x32e   :  { %2488 = vmatpush3.bf16.msra.mxu0 %v2909_v55 }
 0x32f   :  { %2587 = vmatprep.subr.bf16.mxu0 %v3002_v36 }
 0x331   :  { %2085 = vmatmul.mubr.bf16.vlgmr.msra.gmra.mrb[36].mxu0 %v1564_v45 }
 0x332   :  { %2092 = vmatprep.mubr.bf16.mxu0 %v1635_v22  ;;  %2589 = vmatpush3.bf16.msra.mxu0 %v2588_v14 }
 0x333   :  { %2590 = vmatprep.subr.bf16.mxu0 %v3002_v36 }
 0x336   :  { %2592 = vmatpush3.bf16.msra.mxu0 %v2591_v60 }
 0x337   :  { %2593 = vmatprep.subr.bf16.mxu0 %v3002_v36 }
 0x339   :  { %2093 = vmatmul.mubr.bf16.gmra.mrb[40].mxu0 %v1626_v33 }
 0x33a   :  { %2099 = vmatprep.mubr.bf16.mxu0 %v1634_v41  ;;  %2595 = vmatpush3.bf16.msra.mxu0 %v2594_v38 }
 0x33b   :  { %2596 = vmatprep.subr.bf16.mxu0 %v3002_v36 }
 0x33e   :  { %2598 = vmatpush3.bf16.msra.mxu0 %v2597_v13 }
 0x33f   :  { %2599 = vmatprep.subr.bf16.mxu0 %v3002_v36 }
 0x341   :  { %2100 = vmatmul.mubr.bf16.gmra.mrb[44].mxu0 %v1625_v24 }
 0x342   :  { %2584 = vmatprep.mubr.msk.f32.mxu0 %vm2996_vm1, %v2914_v27  ;;  %2601 = vmatpush3.bf16.msra.mxu0 %v2600_v56 }
 0x343   :  { %2602 = vmatprep.subr.bf16.mxu0 %v3002_v36 }
 0x346   :  { %2604 = vmatpush3.bf16.msra.mxu0 %v2603_v0 }
 0x347   :  { %2605 = vmatprep.subr.bf16.mxu0 %v3002_v36 }
 0x34a   :  { %2607 = vmatpush3.bf16.msra.mxu0 %v2606_v16 }
 0x34b   :  { %2608 = vmatprep.subr.bf16.mxu0 %v3002_v36 }
 0x34e   :  { %2610 = vmatpush3.bf16.msra.mxu0 %v2609_v1 }
 0x3c4   :  { %v2421_v2 = vpop.f32.mrb[12].mxu0 }
 0x3c5   :  { %v2422_v3 = vpop.f32.mrb[13].mxu0 }
 0x3c6   :  { %v2423_v4 = vadd.f32 %v2422_v3, %v2421_v2  ;;  %v2424_v43 = vpop.f32.mrb[14].mxu0 }
 0x3c7   :  { %v2425_v54 = vpop.f32.mrb[15].mxu0 }
 0x3c8   :  { %v2426_v18 = vadd.f32 %v2425_v54, %v2424_v43  ;;  %v1977_v41 = vadd.f32 %v2423_v4, %v2344_v28 }
 0x3ca   :  { %v1980_v29 = vadd.f32 %v2426_v18, %v2344_v28 }
 0x3d4   :  { %v2427_v5 = vpop.f32.mrb[16].mxu0 }
 0x3d5   :  { %v2428_v6 = vpop.f32.mrb[17].mxu0 }
 0x3d6   :  { %v2430_v59 = vpop.f32.mrb[18].mxu0 }
 0x3d7   :  { %v2431_v44 = vpop.f32.mrb[19].mxu0 }
 0x3d8   :  { %v2432_v50 = vadd.f32 %v2431_v44, %v2430_v59 }
 0x3da   :  { %v1987_v51 = vadd.f32 %v2432_v50, %v2344_v28 }
 0x3dc   :  { %v2433_v8 = vpop.f32.mrb[20].mxu0 }
 0x3dd   :  { %v2434_v9 = vpop.f32.mrb[21].mxu0 }
 0x3de   :  { %v2435_v10 = vadd.f32 %v2434_v9, %v2433_v8  ;;  %v2436_v23 = vpop.f32.mrb[22].mxu0 }
 0x3df   :  { %v2437_v15 = vpop.f32.mrb[23].mxu0 }
 0x3e0   :  { %v1992_v19 = vadd.f32 %v2435_v10, %v2344_v28 }
 0x3e4   :  { %v2455_v11 = vpop.f32.mrb[24].mxu0 }
 0x3e5   :  { %v2456_v45 = vpop.f32.mrb[25].mxu0 }
 0x3e6   :  { %v2457_v24 = vadd.f32 %v2456_v45, %v2455_v11  ;;  %v2458_v25 = vpop.f32.mrb[26].mxu0  ;;  %v2393_v45 = vld [vmem:[%s3507_s9] ss:$0 sm:$0xff]  ;;  %s2243_s9 = sshll.u32 %s3003_s21, 4  ;;  %s2244_s9 = int_to_ptr.vmem [resolvable:$true] %s2243_s9 }
 0x3e7   :  { %v2459_v22 = vpop.f32.mrb[27].mxu0  ;;  %s2959_s22 = scalar_lea.vmem %s2244_s9, 32  ;;  %p2964_p3 = scmp.lt.s32.totalorder %s2244_s9, %s2244_s9 }
 0x3e8   :  { %v2032_v33 = vadd.f32 %v2457_v24, %v1977_v41  ;;  %v2460_v30 = vadd.f32 %v2459_v22, %v2458_v25  ;;  %p2960_p2 = scmp.ne.s32.totalorder %s2244_s9, %s2959_s22  ;;  %p2965_p4 = scmp.lt.s32.totalorder %s2959_s22, %s2959_s22 }
 0x3ea   :  { %v2035_v31 = vadd.f32 %v2460_v30, %v1980_v29  ;;  %p2966_p5 = por %p2965_p4, %p2964_p3 }
 0x3ec   :  { %v2461_v32 = vpop.f32.mrb[28].mxu0  ;;  %p2967_p6 = pnand %p2966_p5, %p2960_p2 }
 0x3ed   :  { %v2462_v35 = vpop.f32.mrb[29].mxu0 }
 0x3ee   :  { %v2464_v39 = vpop.f32.mrb[30].mxu0 }
 0x3ef   :  { %v2465_v40 = vpop.f32.mrb[31].mxu0 }
 0x3f0   :  { %v2466_v12 = vadd.f32 %v2465_v40, %v2464_v39 }
 0x3f2   :  { %v2042_v42 = vadd.f32 %v2466_v12, %v1987_v51 }
 0x3f4   :  { %v2467_v37 = vpop.f32.mrb[32].mxu0 }
 0x3f5   :  { %v2468_v47 = vpop.f32.mrb[33].mxu0 }
 0x3f6   :  { %v2469_v55 = vadd.f32 %v2468_v47, %v2467_v37  ;;  %v2470_v27 = vpop.f32.mrb[34].mxu0 }
 0x3f7   :  { %v2471_v20 = vpop.f32.mrb[35].mxu0 }
 0x3f8   :  { %v2047_v48 = vadd.f32 %v2469_v55, %v1992_v19 }
 0x404   :  { %v2489_v46 = vpop.f32.mrb[36].mxu0 }
 0x405   :  { %v2490_v36 = vpop.f32.mrb[37].mxu0 }
 0x406   :  { %v2491_v14 = vadd.f32 %v2490_v36, %v2489_v46  ;;  %v2492_v49 = vpop.f32.mrb[38].mxu0 }
 0x407   :  { %v2493_v60 = vpop.f32.mrb[39].mxu0 }
 0x408   :  { %v2087_v17 = vadd.f32 %v2491_v14, %v2032_v33  ;;  %v2494_v34 = vadd.f32 %v2493_v60, %v2492_v49 }
 0x40a   :  { %v2090_v7 = vadd.f32 %v2494_v34, %v2035_v31  ;;  %v2107_v38 = vmax.f32 %v2087_v17, 0.0 }
 0x40c   :  { %v2108_v26 = vmax.f32 %v2090_v7, 0.0  ;;  %v2495_v13 = vpop.f32.mrb[40].mxu0 }
 0x40d   :  { %v2496_v21 = vpop.f32.mrb[41].mxu0 }
 0x40e   :  { %v2111_v52 = vadd.f32 %v2108_v26, %v2107_v38  ;;  %v2498_v56 = vpop.f32.mrb[42].mxu0 }
 0x40f   :  { %v2499_v57 = vpop.f32.mrb[43].mxu0 }
 0x410   :  { %v2500_v61 = vadd.f32 %v2499_v57, %v2498_v56  ;;  %v2112_v0 = vrot.slane %v2111_v52, 4 }
 0x412   :  { %v2097_v58 = vadd.f32 %v2500_v61, %v2042_v42  ;;  %v2113_v62 = vadd.f32 %v2112_v0, %v2111_v52 }
 0x414   :  { %v2501_v53 = vpop.f32.mrb[44].mxu0  ;;  %v2114_v4 = vrot.slane %v2113_v62, 2  ;;  %v2109_v43 = vmax.f32 %v2097_v58, 0.0 }
 0x415   :  { %v2502_v16 = vpop.f32.mrb[45].mxu0 }
 0x416   :  { %v2503_v63 = vadd.f32 %v2502_v16, %v2501_v53  ;;  %v2504_v1 = vpop.f32.mrb[46].mxu0  ;;  %v2115_v5 = vadd.f32 %v2114_v4, %v2113_v62 }
 0x417   :  { %v2505_v2 = vpop.f32.mrb[47].mxu0 }
 0x418   :  { %v2102_v3 = vadd.f32 %v2503_v63, %v2047_v48  ;;  %v2116_v44 = vrot.slane %v2115_v5, 1 }
 0x41a   :  { %v2110_v54 = vmax.f32 %v2102_v3, 0.0  ;;  %v2117_v10 = vadd.f32 %v2116_v44, %v2115_v5 }
 0x41c   :  { %v2120_v18 = vadd.f32 %v2110_v54, %v2109_v43  ;;  %v2119_v15 = vmul.f32 0.0625, %v2117_v10 }
 0x41e   :  { %v2121_v6 = vrot.slane %v2120_v18, 4 }
 0x420   :  { %v2122_v59 = vadd.f32 %v2121_v6, %v2120_v18 }
 0x422   :  { %v2123_v50 = vrot.slane %v2122_v59, 2 }
 0x424   :  { %v2124_v8 = vadd.f32 %v2123_v50, %v2122_v59 }
 0x426   :  { %v2125_v9 = vrot.slane %v2124_v8, 1 }
 0x428   :  { %v2126_v23 = vadd.f32 %v2125_v9, %v2124_v8 }
 0x42a   :  { %v2127_v28 = vmul.f32 0.0625, %v2126_v23 }
 0x42c   :  { %v2129_v11 = vsel %vm2128_vm11, %v2119_v15, %v2127_v28 }
 0x42d   :  { %2585 = vmatmul.mubr.f32.vlgmr.msra.gmra.mrb[48].mxu0 %v2129_v11 }
 0x500   :  { %v2219_v41 = vpop.f32.mrb[48].mxu0 }
 0x501   :  { %v2220_v24 = vadd.f32 %v2393_v45, %v2219_v41  ;;  %v2586_v25 = vpop.f32.mrb[49].mxu0 }
 0x503   :  { %v2224_v22 = vsel %vm2223_vm12, %v2220_v24, -inf }
 0x504   :  { %2225 = vmax.xlane.f32.xlu1 %v2224_v22 }
 0x591   :  { %v2226_v29 = vpop.xlane.xlu1 %2225 }
 0x592   :  { %v2227_v33 = vsub.f32 %v2220_v24, %v2226_v29 }
 0x594   :  { %v2228_v30 = vmul.f32 1.442695, %v2227_v33 }
 0x596   :  { %2910 = vpow2.f32 %v2228_v30 }
 0x5a0   :  { %v2911_v31 = vpop.eup %2910 }
 0x5a1   :  { %v2230_v32 = vsel %vm2223_vm12, %v2911_v31, 0.0 }
 0x5a2   :  { %2231 = vadd.xlane.f32.xlu0 %v2230_v32 }
 0x62f   :  { %v2232_v35 = vpop.xlane.xlu0 %2231 }
 0x630   :  { %2912 = vlog2.f32 %v2232_v35 }
 0x63a   :  { %v2913_v39 = vpop.eup %2912 }
 0x63b   :  { %v2234_v40 = vmul.f32 0.6931472, %v2913_v39 }
 0x63d   :  { %v2235_v51 = vsub.f32 %v2227_v33, %v2234_v40 }
 0x63f   :  { %2236 = vst.msk [vmem:[#allocation10] sm:$0x3] %vm2223_vm12, %v2235_v51 }
 0x640   :  { %2970 = shalt.err (!%p2967_p6)
}
 0x641   :  { %s2971_s25 = scalar_lea.hbm %s3508_s10, 32 }
 0x642   :  { %p2972_p7 = scmp.ne.s32.totalorder %s3508_s10, %s2971_s25  ;;  %p2975_p8 = scmp.lt.u32.totalorder %s2971_s25, %s3508_s10 }
 0x644   :  { %p2977_p9 = pnand %p2975_p8, %p2972_p7 }
 0x646   :  { %2980 = shalt.err (!%p2977_p9)
}
 0x647   :  { %2246 = dma.vmem_to_hbm [thread:$0]  %s2244_s9, 32, %s3508_s10, [#allocation7]  }
 0x648   :  { %2985 = dma.done.wait [#allocation7], 32  }
 0x649   :  { %2986 = vsyncadd [#allocation7], 4294967264 }
 0x64a   :  { %2250 = vsyncpa [#allocation6], 1 }
 0x64b   :  { %2251 = vsyncpa [#allocation9], 1 }
 0x64c   :  { %2252 = vsyncpa [#allocation7], 1 }

</bundles_post_ra>
